<compile_context>
chip_gen: v7x
topology: tpu7x:2x2x1
jax: 0.10.0
libtpu: 0.0.40
codegen_flags: <defaults>
</compile_context>

<pallas_src>
import numpy as np

import jax
import jax.numpy as jnp
from jax.experimental import pallas as pl
from jax.experimental.pallas import tpu as pltpu

LANE = 128          # lane padding for feature dims
K1 = 5 * 28         # conv1 contraction depth (kh folded into K)
K2 = 5 * LANE       # conv2 contraction depth (kh folded into K)
TB_CONV = 64        # conv-trunk batch tile (images per grid step)
TB_HEAD = 256       # head batch tile


# ---------------------------------------------------------------------------
# Pallas kernels
# ---------------------------------------------------------------------------

def _conv_trunk_kernel(x_ref, m1_ref, b1_ref, m2_ref, b2_ref, o_ref):
    """conv1 -> 2x2 pool/relu -> conv2 -> W-pool/bias/relu for one batch tile.

    x_ref : (TB*32, 140) bf16  im2col'd input; per image: 12 even conv1 output rows,
            4 zero rows, 12 odd rows, 4 zero rows; K index = kh*28 + w.
    m1_ref: (140, 256) bf16    conv1 band matrix, cols = (wo%2)*128 + (wo//2)*10 + c.
    m2_ref: (640, 256) bf16    conv2 band matrix, rows = kh*128 + w1*10 + ci,
                               cols = (w2%2)*128 + (w2//2)*20 + c2.
    o_ref : (TB*8, 128) bf16   conv2 rows (image, h2), W-pooled + bias + relu; the
                               H-direction pool is finished outside (it commutes).
    """
    f32 = jnp.float32
    tb = o_ref.shape[0] // 8  # images in this tile

    # ---- conv1: single lane-dense MXU matmul (kh folded into K) ----------------
    y1 = jnp.dot(x_ref[...], m1_ref[...], preferred_element_type=f32)
    y1 = y1.reshape(tb, 32, 2 * LANE)            # aligned split (32 % 8 == 0)

    # 2x2 max-pool: H parity lives in the aligned 16-row halves (host row order),
    # W parity in the 128-lane halves.  Bias & relu commute with the max.
    h1 = jnp.maximum(y1[:, 0:16, :], y1[:, 16:32, :])
    p1 = jnp.maximum(h1[:, :, 0:LANE], h1[:, :, LANE:2 * LANE])
    p1 = jnp.maximum(p1 + b1_ref[...], 0.0)      # (tb, 16, 128); rows 12..15 pad

    # ---- conv2: fold kh into K by concatenating 5 shifted row windows on lanes --
    # TODO(synk): nn.Dropout2d is stochastic in training; identity here (eval mode).
    lhs2 = jnp.concatenate([p1[:, kh:kh + 8, :] for kh in range(5)], axis=2)
    lhs2 = lhs2.reshape(tb * 8, K2).astype(jnp.bfloat16)   # aligned merge (8 | 8)
    y2 = jnp.dot(lhs2, m2_ref[...], preferred_element_type=f32)   # (tb*8, 256)

    # W-direction pool + bias + relu, one dense store.
    p2 = jnp.maximum(y2[:, 0:LANE], y2[:, LANE:2 * LANE])
    p2 = jnp.maximum(p2 + b2_ref[...], 0.0)
    o_ref[...] = p2.astype(o_ref.dtype)


def _head_kernel(x_ref, w1_ref, b1_ref, w2_ref, b2_ref, o_ref):
    """fc1 + relu + (dropout=id) + fc2 + log_softmax, feature dims padded to 128."""
    f32 = jnp.float32
    h = jnp.dot(x_ref[...], w1_ref[...], preferred_element_type=f32) + b1_ref[...]
    h = jnp.maximum(h, 0.0).astype(jnp.bfloat16)
    # TODO(synk): F.dropout(training=True) is stochastic; identity here (eval mode).
    logits = jnp.dot(h, w2_ref[...], preferred_element_type=f32) + b2_ref[...]
    m = jnp.max(logits, axis=-1, keepdims=True)
    lse = jnp.log(jnp.sum(jnp.exp(logits - m), axis=-1, keepdims=True)) + m
    o_ref[...] = logits - lse


# ---------------------------------------------------------------------------
# Parameter init (PyTorch layout) and packing into kernel layouts
# ---------------------------------------------------------------------------

def init_params(key):
    """Synthetic parameters in PyTorch shapes (uniform +-1/sqrt(fan_in))."""
    ks = jax.random.split(key, 8)

    def u(k, shape, fan_in):
        b = 1.0 / np.sqrt(fan_in)
        return jax.random.uniform(k, shape, jnp.float32, -b, b)

    return {
        "conv1_w": u(ks[0], (10, 1, 5, 5), 25),
        "conv1_b": u(ks[1], (10,), 25),
        "conv2_w": u(ks[2], (20, 10, 5, 5), 250),
        "conv2_b": u(ks[3], (20,), 250),
        "fc1_w": u(ks[4], (50, 320), 320),
        "fc1_b": u(ks[5], (50,), 320),
        "fc2_w": u(ks[6], (10, 50), 50),
        "fc2_b": u(ks[7], (10,), 50),
    }


def pack_params(p):
    """Fold conv im2col (kh into K, kw banded), pool parity, the NCHW flatten
    permutation and lane padding into host-built matrices (one-time cost)."""
    w1 = np.asarray(p["conv1_w"], np.float32)[:, 0]   # (10, 5, 5)   [c, kh, kw]
    b1 = np.asarray(p["conv1_b"], np.float32)
    w2 = np.asarray(p["conv2_w"], np.float32)          # (20, 10, 5, 5) [c2, ci, kh, kw]
    b2 = np.asarray(p["conv2_b"], np.float32)
    fw1 = np.asarray(p["fc1_w"], np.float32)            # (50, 320)
    fb1 = np.asarray(p["fc1_b"], np.float32)
    fw2 = np.asarray(p["fc2_w"], np.float32)             # (10, 50)
    fb2 = np.asarray(p["fc2_b"], np.float32)

    # conv1 band matrix (K-folded): rows = kh*28 + w, cols = (wo%2)*128 + (wo//2)*10 + c
    m1 = np.zeros((K1, 2 * LANE), np.float32)
    for kh in range(5):
        for wo in range(24):
            col0 = (wo % 2) * LANE + (wo // 2) * 10
            for kw in range(5):
                m1[kh * 28 + wo + kw, col0:col0 + 10] = w1[:, kh, kw]
    b1t = np.zeros((1, LANE), np.float32)
    for wp in range(12):
        b1t[0, wp * 10:wp * 10 + 10] = b1

    # conv2 band matrix (K-folded): rows = kh*128 + w1*10 + ci,
    # cols = (w2%2)*128 + (w2//2)*20 + c2
    m2 = np.zeros((K2, 2 * LANE), np.float32)
    for kh in range(5):
        for w2pos in range(8):
            col0 = (w2pos % 2) * LANE + (w2pos // 2) * 20
            for kw in range(5):
                w1pos = w2pos + kw
                r0 = kh * LANE + w1pos * 10
                m2[r0:r0 + 10, col0:col0 + 20] = w2[:, :, kh, kw].T
    b2t = np.zeros((1, LANE), np.float32)
    for wp in range(4):
        b2t[0, wp * 20:wp * 20 + 20] = b2

    # fc1: feature f = hp*128 + wp*20 + c2  <->  torch flatten index c2*16 + hp*4 + wp
    w1k = np.zeros((4 * LANE, LANE), np.float32)
    for hp in range(4):
        for wp in range(4):
            for c in range(20):
                w1k[hp * LANE + wp * 20 + c, :50] = fw1[:, c * 16 + hp * 4 + wp]
    b1k = np.zeros((1, LANE), np.float32)
    b1k[0, :50] = fb1

    # fc2: pad hidden rows 50->128 (zeros); pad classes 10->128 with a -1e30 bias so
    # the padded logits vanish under log_softmax.
    w2k = np.zeros((LANE, LANE), np.float32)
    w2k[:50, :10] = fw2.T
    b2k = np.full((1, LANE), -1e30, np.float32)
    b2k[0, :10] = fb2

    return {
        "m1": jnp.asarray(m1, jnp.bfloat16), "b1t": jnp.asarray(b1t),
        "m2": jnp.asarray(m2, jnp.bfloat16), "b2t": jnp.asarray(b2t),
        "w1k": jnp.asarray(w1k, jnp.bfloat16), "b1k": jnp.asarray(b1k),
        "w2k": jnp.asarray(w2k, jnp.bfloat16), "b2k": jnp.asarray(b2k),
    }


# ---------------------------------------------------------------------------
# Forward pass
# ---------------------------------------------------------------------------

def _round_up(x, m):
    return ((x + m - 1) // m) * m


@jax.jit
def net_forward(packed, x_nchw):
    n = x_nchw.shape[0]
    x = x_nchw.reshape(n, 28, 28).astype(jnp.bfloat16)

    tbc = min(TB_CONV, _round_up(n, 8))
    npad = _round_up(n, tbc)
    if npad != n:
        x = jnp.concatenate([x, jnp.zeros((npad - n, 28, 28), jnp.bfloat16)], axis=0)

    # Host-side im2col over kh (K = 5*28 = 140).  Row order per image: 12 even conv1
    # output rows, 4 zero rows, 12 odd rows, 4 zero rows -> the in-kernel 2x2 pool's
    # H direction is a max of two 8-aligned row slices.
    c1 = jnp.concatenate([x[:, kh:kh + 24, :] for kh in range(5)], axis=2)  # (npad,24,140)
    zrows = jnp.zeros((npad, 4, K1), jnp.bfloat16)
    lhs1 = jnp.concatenate([c1[:, 0:24:2, :], zrows, c1[:, 1:24:2, :], zrows],
                           axis=1).reshape(npad * 32, K1)

    cparams = pltpu.CompilerParams(dimension_semantics=("parallel",),
                                   vmem_limit_bytes=32 * 1024 * 1024)

    conv_out = pl.pallas_call(
        _conv_trunk_kernel,
        out_shape=jax.ShapeDtypeStruct((npad * 8, LANE), jnp.bfloat16),
        grid_spec=pltpu.PrefetchScalarGridSpec(
            num_scalar_prefetch=0,
            grid=(npad // tbc,),
            in_specs=[
                pl.BlockSpec((tbc * 32, K1), lambda i: (i, 0)),
                pl.BlockSpec((K1, 2 * LANE), lambda i: (0, 0)),
                pl.BlockSpec((1, LANE), lambda i: (0, 0)),
                pl.BlockSpec((K2, 2 * LANE), lambda i: (0, 0)),
                pl.BlockSpec((1, LANE), lambda i: (0, 0)),
            ],
            out_specs=pl.BlockSpec((tbc * 8, LANE), lambda i: (i, 0)),
        ),
        compiler_params=cparams,
    )(lhs1, packed["m1"], packed["b1t"], packed["m2"], packed["b2t"])

    # Finish conv2's H-direction 2x2 pool (commutes with the bias+relu already
    # applied in-kernel) and flatten; the NCHW permutation is folded into w1k.
    xflat = jnp.max(conv_out.reshape(npad, 4, 2, LANE), axis=2).reshape(npad, 4 * LANE)

    tbh = min(TB_HEAD, npad)
    nh = _round_up(npad, tbh)
    if nh != npad:
        xflat = jnp.concatenate(
            [xflat, jnp.zeros((nh - npad, 4 * LANE), jnp.bfloat16)], axis=0)

    logits = pl.pallas_call(
        _head_kernel,
        out_shape=jax.ShapeDtypeStruct((nh, LANE), jnp.float32),
        grid_spec=pltpu.PrefetchScalarGridSpec(
            num_scalar_prefetch=0,
            grid=(nh // tbh,),
            in_specs=[
                pl.BlockSpec((tbh, 4 * LANE), lambda i: (i, 0)),
                pl.BlockSpec((4 * LANE, LANE), lambda i: (0, 0)),
                pl.BlockSpec((1, LANE), lambda i: (0, 0)),
                pl.BlockSpec((LANE, LANE), lambda i: (0, 0)),
                pl.BlockSpec((1, LANE), lambda i: (0, 0)),
            ],
            out_specs=pl.BlockSpec((tbh, LANE), lambda i: (i, 0)),
        ),
        compiler_params=cparams,
    )(xflat, packed["w1k"], packed["b1k"], packed["w2k"], packed["b2k"])

    return logits[:n, :10]


# ---------------------------------------------------------------------------
# Pure-JAX reference (f32) for a loose numerical check
# ---------------------------------------------------------------------------

def _reference_forward(p, x_nchw):
    x = x_nchw.astype(jnp.float32)

    def conv(x, w, b):
        y = jax.lax.conv_general_dilated(
            x, w, window_strides=(1, 1), padding="VALID",
            dimension_numbers=("NCHW", "OIHW", "NCHW"))
        return y + b[None, :, None, None]

    def pool2(x):
        n, c, h, w = x.shape
        return x.reshape(n, c, h // 2, 2, w // 2, 2).max(axis=(3, 5))

    x = jnp.maximum(pool2(conv(x, p["conv1_w"], p["conv1_b"])), 0.0)
    x = jnp.maximum(pool2(conv(x, p["conv2_w"], p["conv2_b"])), 0.0)
    x = x.reshape(x.shape[0], 320)
    x = jnp.maximum(x @ p["fc1_w"].T + p["fc1_b"], 0.0)
    x = x @ p["fc2_w"].T + p["fc2_b"]
    return jax.nn.log_softmax(x, axis=1)


if __name__ == "__main__":
    key = jax.random.PRNGKey(0)
    k_params, k_x = jax.random.split(key)

    params = init_params(k_params)
    packed = pack_params(params)
    x = jax.random.normal(k_x, (2, 1, 28, 28), dtype=jnp.float32)  # NCHW MNIST-sized

    out = jax.block_until_ready(net_forward(packed, x))

    assert out.shape == (2, 10), out.shape
    assert bool(jnp.all(jnp.isfinite(out))), out
    # log_softmax rows must exponentiate-sum to 1
    row_sums = jnp.sum(jnp.exp(out), axis=1)
    assert bool(jnp.all(jnp.abs(row_sums - 1.0) < 1e-3)), row_sums
    # bf16 matmul operands vs f32 reference: loose tolerance
    ref = _reference_forward(params, x)
    assert bool(jnp.max(jnp.abs(out - ref)) < 0.2), (out, ref)

    print("KERNEL_OK")
</pallas_src>

<mosaic_0001>
module attributes {stable_mosaic.version = 11 : i64} {
  func.func @_conv_trunk_kernel(%arg0: i32, %arg1: memref<256x140xbf16, #tpu.memory_space<vmem>>, %arg2: memref<140x256xbf16, #tpu.memory_space<vmem>>, %arg3: memref<1x128xf32, #tpu.memory_space<vmem>>, %arg4: memref<640x256xbf16, #tpu.memory_space<vmem>>, %arg5: memref<1x128xf32, #tpu.memory_space<vmem>>, %arg6: memref<64x128xbf16, #tpu.memory_space<vmem>>) attributes {dimension_semantics = [#tpu.dimension_semantics<parallel>], iteration_bounds = array<i64: 1>, scalar_prefetch = 0 : i64, scratch_operands = 0 : i64, tpu.core_type = #tpu.core_type<tc>, window_params = [{transform_indices = @transform_0, window_bounds = array<i64: 256, 140>}, {pipeline_mode = #tpu.pipeline_mode<synchronous>, transform_indices = @transform_1, window_bounds = array<i64: 140, 256>}, {pipeline_mode = #tpu.pipeline_mode<synchronous>, transform_indices = @transform_2, window_bounds = array<i64: 1, 128>}, {pipeline_mode = #tpu.pipeline_mode<synchronous>, transform_indices = @transform_3, window_bounds = array<i64: 640, 256>}, {pipeline_mode = #tpu.pipeline_mode<synchronous>, transform_indices = @transform_4, window_bounds = array<i64: 1, 128>}, {transform_indices = @transform_5, window_bounds = array<i64: 64, 128>}]} {
    %c0 = arith.constant 0 : index
    %c0_0 = arith.constant 0 : index
    %0 = vector.load %arg1[%c0, %c0_0] : memref<256x140xbf16, #tpu.memory_space<vmem>>, vector<256x140xbf16>
    %c0_1 = arith.constant 0 : index
    %c0_2 = arith.constant 0 : index
    %1 = vector.load %arg2[%c0_1, %c0_2] : memref<140x256xbf16, #tpu.memory_space<vmem>>, vector<140x256xbf16>
    %cst = arith.constant dense<0.000000e+00> : vector<256x256xf32>
    %2 = tpu.matmul %0, %1, %cst {dimension_numbers = #tpu.dot_dimension_numbers<[1], [0], [0], [1], [0, 0, 1, 1], [], []>} : vector<256x140xbf16>, vector<140x256xbf16>, vector<256x256xf32> -> vector<256x256xf32>
    %3 = vector.shape_cast %2 : vector<256x256xf32> to vector<8x32x256xf32>
    %4 = vector.extract_strided_slice %3 {offsets = [0, 0, 0], sizes = [8, 16, 256], strides = [1, 1, 1]} : vector<8x32x256xf32> to vector<8x16x256xf32>
    %5 = vector.extract_strided_slice %3 {offsets = [0, 16, 0], sizes = [8, 16, 256], strides = [1, 1, 1]} : vector<8x32x256xf32> to vector<8x16x256xf32>
    %6 = arith.maximumf %4, %5 : vector<8x16x256xf32>
    %7 = vector.extract_strided_slice %6 {offsets = [0, 0, 0], sizes = [8, 16, 128], strides = [1, 1, 1]} : vector<8x16x256xf32> to vector<8x16x128xf32>
    %8 = vector.extract_strided_slice %6 {offsets = [0, 0, 128], sizes = [8, 16, 128], strides = [1, 1, 1]} : vector<8x16x256xf32> to vector<8x16x128xf32>
    %9 = arith.maximumf %7, %8 : vector<8x16x128xf32>
    %c0_3 = arith.constant 0 : index
    %c0_4 = arith.constant 0 : index
    %10 = vector.load %arg3[%c0_3, %c0_4] : memref<1x128xf32, #tpu.memory_space<vmem>>, vector<1x128xf32>
    %11 = vector.shape_cast %10 : vector<1x128xf32> to vector<1x1x128xf32>
    %12 = vector.broadcast %11 : vector<1x1x128xf32> to vector<8x16x128xf32>
    %13 = arith.addf %9, %12 : vector<8x16x128xf32>
    %cst_5 = arith.constant 0.000000e+00 : f32
    %14 = vector.broadcast %cst_5 : f32 to vector<8x16x128xf32>
    %15 = arith.maximumf %13, %14 : vector<8x16x128xf32>
    %16 = vector.extract_strided_slice %15 {offsets = [0, 0, 0], sizes = [8, 8, 128], strides = [1, 1, 1]} : vector<8x16x128xf32> to vector<8x8x128xf32>
    %17 = vector.extract_strided_slice %15 {offsets = [0, 1, 0], sizes = [8, 8, 128], strides = [1, 1, 1]} : vector<8x16x128xf32> to vector<8x8x128xf32>
    %18 = vector.extract_strided_slice %15 {offsets = [0, 2, 0], sizes = [8, 8, 128], strides = [1, 1, 1]} : vector<8x16x128xf32> to vector<8x8x128xf32>
    %19 = vector.extract_strided_slice %15 {offsets = [0, 3, 0], sizes = [8, 8, 128], strides = [1, 1, 1]} : vector<8x16x128xf32> to vector<8x8x128xf32>
    %20 = vector.extract_strided_slice %15 {offsets = [0, 4, 0], sizes = [8, 8, 128], strides = [1, 1, 1]} : vector<8x16x128xf32> to vector<8x8x128xf32>
    %21 = tpu.concatenate %16, %17, %18, %19, %20 in 2 : vector<8x8x128xf32>, vector<8x8x128xf32>, vector<8x8x128xf32>, vector<8x8x128xf32>, vector<8x8x128xf32> -> vector<8x8x640xf32>
    %22 = vector.shape_cast %21 : vector<8x8x640xf32> to vector<64x640xf32>
    %23 = arith.truncf %22 : vector<64x640xf32> to vector<64x640xbf16>
    %c0_6 = arith.constant 0 : index
    %c0_7 = arith.constant 0 : index
    %24 = vector.load %arg4[%c0_6, %c0_7] : memref<640x256xbf16, #tpu.memory_space<vmem>>, vector<640x256xbf16>
    %cst_8 = arith.constant dense<0.000000e+00> : vector<64x256xf32>
    %25 = tpu.matmul %23, %24, %cst_8 {dimension_numbers = #tpu.dot_dimension_numbers<[1], [0], [0], [1], [0, 0, 1, 1], [], []>} : vector<64x640xbf16>, vector<640x256xbf16>, vector<64x256xf32> -> vector<64x256xf32>
    %26 = vector.extract_strided_slice %25 {offsets = [0, 0], sizes = [64, 128], strides = [1, 1]} : vector<64x256xf32> to vector<64x128xf32>
    %27 = vector.extract_strided_slice %25 {offsets = [0, 128], sizes = [64, 128], strides = [1, 1]} : vector<64x256xf32> to vector<64x128xf32>
    %28 = arith.maximumf %26, %27 : vector<64x128xf32>
    %c0_9 = arith.constant 0 : index
    %c0_10 = arith.constant 0 : index
    %29 = vector.load %arg5[%c0_9, %c0_10] : memref<1x128xf32, #tpu.memory_space<vmem>>, vector<1x128xf32>
    %30 = vector.broadcast %29 : vector<1x128xf32> to vector<64x128xf32>
    %31 = arith.addf %28, %30 : vector<64x128xf32>
    %cst_11 = arith.constant 0.000000e+00 : f32
    %32 = vector.broadcast %cst_11 : f32 to vector<64x128xf32>
    %33 = arith.maximumf %31, %32 : vector<64x128xf32>
    %34 = arith.truncf %33 : vector<64x128xf32> to vector<64x128xbf16>
    %c0_12 = arith.constant 0 : index
    %c0_13 = arith.constant 0 : index
    %35 = vector.load %arg6[%c0_12, %c0_13] : memref<64x128xbf16, #tpu.memory_space<vmem>>, vector<64x128xbf16>
    tpu.vector_store %arg6[%c0_12, %c0_13], %34 {strides = array<i32>} : memref<64x128xbf16, #tpu.memory_space<vmem>>, vector<64x128xbf16>,
    return
  }
  func.func @transform_0(%arg0: i32) -> (i32, i32) {
    %c0_i32 = arith.constant 0 : i32
    %c0_i32_0 = arith.constant 0 : i32
    return %arg0, %c0_i32 : i32, i32
  }
  func.func @transform_1(%arg0: i32) -> (i32, i32) {
    %c0_i32 = arith.constant 0 : i32
    %c0_i32_0 = arith.constant 0 : i32
    %c0_i32_1 = arith.constant 0 : i32
    return %c0_i32, %c0_i32_0 : i32, i32
  }
  func.func @transform_2(%arg0: i32) -> (i32, i32) {
    %c0_i32 = arith.constant 0 : i32
    %c0_i32_0 = arith.constant 0 : i32
    %c0_i32_1 = arith.constant 0 : i32
    return %c0_i32, %c0_i32_0 : i32, i32
  }
  func.func @transform_3(%arg0: i32) -> (i32, i32) {
    %c0_i32 = arith.constant 0 : i32
    %c0_i32_0 = arith.constant 0 : i32
    %c0_i32_1 = arith.constant 0 : i32
    return %c0_i32, %c0_i32_0 : i32, i32
  }
  func.func @transform_4(%arg0: i32) -> (i32, i32) {
    %c0_i32 = arith.constant 0 : i32
    %c0_i32_0 = arith.constant 0 : i32
    %c0_i32_1 = arith.constant 0 : i32
    return %c0_i32, %c0_i32_0 : i32, i32
  }
  func.func @transform_5(%arg0: i32) -> (i32, i32) {
    %c0_i32 = arith.constant 0 : i32
    %c0_i32_0 = arith.constant 0 : i32
    return %arg0, %c0_i32 : i32, i32
  }
}

module attributes {stable_mosaic.version = 11 : i64} {
  func.func @_head_kernel(%arg0: i32, %arg1: memref<8x512xbf16, #tpu.memory_space<vmem>>, %arg2: memref<512x128xbf16, #tpu.memory_space<vmem>>, %arg3: memref<1x128xf32, #tpu.memory_space<vmem>>, %arg4: memref<128x128xbf16, #tpu.memory_space<vmem>>, %arg5: memref<1x128xf32, #tpu.memory_space<vmem>>, %arg6: memref<8x128xf32, #tpu.memory_space<vmem>>) attributes {dimension_semantics = [#tpu.dimension_semantics<parallel>], iteration_bounds = array<i64: 1>, scalar_prefetch = 0 : i64, scratch_operands = 0 : i64, tpu.core_type = #tpu.core_type<tc>, window_params = [{transform_indices = @transform_0, window_bounds = array<i64: 8, 512>}, {pipeline_mode = #tpu.pipeline_mode<synchronous>, transform_indices = @transform_1, window_bounds = array<i64: 512, 128>}, {pipeline_mode = #tpu.pipeline_mode<synchronous>, transform_indices = @transform_2, window_bounds = array<i64: 1, 128>}, {pipeline_mode = #tpu.pipeline_mode<synchronous>, transform_indices = @transform_3, window_bounds = array<i64: 128, 128>}, {pipeline_mode = #tpu.pipeline_mode<synchronous>, transform_indices = @transform_4, window_bounds = array<i64: 1, 128>}, {transform_indices = @transform_5, window_bounds = array<i64: 8, 128>}]} {
    %c0 = arith.constant 0 : index
    %c0_0 = arith.constant 0 : index
    %0 = vector.load %arg1[%c0, %c0_0] : memref<8x512xbf16, #tpu.memory_space<vmem>>, vector<8x512xbf16>
    %c0_1 = arith.constant 0 : index
    %c0_2 = arith.constant 0 : index
    %1 = vector.load %arg2[%c0_1, %c0_2] : memref<512x128xbf16, #tpu.memory_space<vmem>>, vector<512x128xbf16>
    %cst = arith.constant dense<0.000000e+00> : vector<8x128xf32>
    %2 = tpu.matmul %0, %1, %cst {dimension_numbers = #tpu.dot_dimension_numbers<[1], [0], [0], [1], [0, 0, 1, 1], [], []>} : vector<8x512xbf16>, vector<512x128xbf16>, vector<8x128xf32> -> vector<8x128xf32>
    %c0_3 = arith.constant 0 : index
    %c0_4 = arith.constant 0 : index
    %3 = vector.load %arg3[%c0_3, %c0_4] : memref<1x128xf32, #tpu.memory_space<vmem>>, vector<1x128xf32>
    %4 = vector.broadcast %3 : vector<1x128xf32> to vector<8x128xf32>
    %5 = arith.addf %2, %4 : vector<8x128xf32>
    %cst_5 = arith.constant 0.000000e+00 : f32
    %6 = vector.broadcast %cst_5 : f32 to vector<8x128xf32>
    %7 = arith.maximumf %5, %6 : vector<8x128xf32>
    %8 = arith.truncf %7 : vector<8x128xf32> to vector<8x128xbf16>
    %c0_6 = arith.constant 0 : index
    %c0_7 = arith.constant 0 : index
    %9 = vector.load %arg4[%c0_6, %c0_7] : memref<128x128xbf16, #tpu.memory_space<vmem>>, vector<128x128xbf16>
    %cst_8 = arith.constant dense<0.000000e+00> : vector<8x128xf32>
    %10 = tpu.matmul %8, %9, %cst_8 {dimension_numbers = #tpu.dot_dimension_numbers<[1], [0], [0], [1], [0, 0, 1, 1], [], []>} : vector<8x128xbf16>, vector<128x128xbf16>, vector<8x128xf32> -> vector<8x128xf32>
    %c0_9 = arith.constant 0 : index
    %c0_10 = arith.constant 0 : index
    %11 = vector.load %arg5[%c0_9, %c0_10] : memref<1x128xf32, #tpu.memory_space<vmem>>, vector<1x128xf32>
    %12 = vector.broadcast %11 : vector<1x128xf32> to vector<8x128xf32>
    %13 = arith.addf %10, %12 : vector<8x128xf32>
    %cst_11 = arith.constant dense<0xFF800000> : vector<8xf32>
    %14 = vector.multi_reduction <maximumf>, %13, %cst_11 [1] : vector<8x128xf32> to vector<8xf32>
    %15 = vector.shape_cast %14 : vector<8xf32> to vector<8x1xf32>
    %16 = vector.broadcast %15 : vector<8x1xf32> to vector<8x128xf32>
    %17 = arith.subf %13, %16 : vector<8x128xf32>
    %18 = math.exp %17 : vector<8x128xf32>
    %cst_12 = arith.constant dense<0.000000e+00> : vector<8xf32>
    %19 = vector.multi_reduction <add>, %18, %cst_12 [1] : vector<8x128xf32> to vector<8xf32>
    %20 = vector.shape_cast %19 : vector<8xf32> to vector<8x1xf32>
    %21 = math.log %20 : vector<8x1xf32>
    %22 = arith.addf %21, %15 : vector<8x1xf32>
    %23 = vector.broadcast %22 : vector<8x1xf32> to vector<8x128xf32>
    %24 = arith.subf %13, %23 : vector<8x128xf32>
    %c0_13 = arith.constant 0 : index
    %c0_14 = arith.constant 0 : index
    %25 = vector.load %arg6[%c0_13, %c0_14] : memref<8x128xf32, #tpu.memory_space<vmem>>, vector<8x128xf32>
    tpu.vector_store %arg6[%c0_13, %c0_14], %24 {strides = array<i32>} : memref<8x128xf32, #tpu.memory_space<vmem>>, vector<8x128xf32>,
    return
  }
  func.func @transform_0(%arg0: i32) -> (i32, i32) {
    %c0_i32 = arith.constant 0 : i32
    %c0_i32_0 = arith.constant 0 : i32
    return %arg0, %c0_i32 : i32, i32
  }
  func.func @transform_1(%arg0: i32) -> (i32, i32) {
    %c0_i32 = arith.constant 0 : i32
    %c0_i32_0 = arith.constant 0 : i32
    %c0_i32_1 = arith.constant 0 : i32
    return %c0_i32, %c0_i32_0 : i32, i32
  }
  func.func @transform_2(%arg0: i32) -> (i32, i32) {
    %c0_i32 = arith.constant 0 : i32
    %c0_i32_0 = arith.constant 0 : i32
    %c0_i32_1 = arith.constant 0 : i32
    return %c0_i32, %c0_i32_0 : i32, i32
  }
  func.func @transform_3(%arg0: i32) -> (i32, i32) {
    %c0_i32 = arith.constant 0 : i32
    %c0_i32_0 = arith.constant 0 : i32
    %c0_i32_1 = arith.constant 0 : i32
    return %c0_i32, %c0_i32_0 : i32, i32
  }
  func.func @transform_4(%arg0: i32) -> (i32, i32) {
    %c0_i32 = arith.constant 0 : i32
    %c0_i32_0 = arith.constant 0 : i32
    %c0_i32_1 = arith.constant 0 : i32
    return %c0_i32, %c0_i32_0 : i32, i32
  }
  func.func @transform_5(%arg0: i32) -> (i32, i32) {
    %c0_i32 = arith.constant 0 : i32
    %c0_i32_0 = arith.constant 0 : i32
    return %arg0, %c0_i32 : i32, i32
  }
}

</mosaic_0001>

<bundles_post_ra>
// kernel: net_forward.3
= control target key start
LH: loop header
LB: loop body
LE: loop exit
PB: predicated region body
PF: predicated region fallthrough
CT: control target
= control target key end

     0   :  { %v678_v39 = vmov 0.0   ;;  %vm679_vm0 = vmmov 0   ;;  %s845_s1 = inlined_call_operand.vmem [shape: bf16[512,128], index: 1, kind: input, shape index: {}]   ;;  %s846_s0 = inlined_call_operand.vmem [shape: bf16[8,512], index: 0, kind: input, shape index: {}]   ;;  %s847_s3 = inlined_call_operand.vmem [shape: bf16[128,128], index: 3, kind: input, shape index: {}]   ;;  %s848_s2 = inlined_call_operand.vmem [shape: f32[1,128], index: 2, kind: input, shape index: {}]   ;;  %s849_s4 = inlined_call_operand.vmem [shape: f32[1,128], index: 4, kind: input, shape index: {}]   ;;  %s850_s5 = inlined_call_operand.vmem [shape: f32[8,128], index: 5, kind: output, shape index: {}]  }
   0x1   :  { %v630_v0 = vld [vmem:[%s845_s1 + $0x40] sm:$0xff]   ;;  %v634_v4 = vld [vmem:[%s845_s1 + $0x48] sm:$0xff]   ;;  %v638_v8 = vld [vmem:[%s845_s1 + $0x50] sm:$0xff]  }
   0x2   :  { %v631_v1 = vld [vmem:[%s845_s1 + $0xc0] sm:$0xff]   ;;  %555 = vmatprep.subr.bf16.mxu0 %v630_v0  ;;  %v635_v5 = vld [vmem:[%s845_s1 + $0xc8] sm:$0xff]   ;;  %v639_v9 = vld [vmem:[%s845_s1 + $0xd0] sm:$0xff]  }
   0x3   :  { %v632_v2 = vld [vmem:[%s845_s1] sm:$0xff]   ;;  %577 = vmatprep.subr.bf16.mxu1 %v631_v1  ;;  %v636_v6 = vld [vmem:[%s845_s1 + $0x8] sm:$0xff]   ;;  %v640_v10 = vld [vmem:[%s845_s1 + $0x10] sm:$0xff]  }
   0x4   :  { %v633_v3 = vld [vmem:[%s845_s1 + $0x80] sm:$0xff]   ;;  %556 = vmatpush3.bf16.msra.mxu0 %v632_v2  ;;  %v637_v7 = vld [vmem:[%s845_s1 + $0x88] sm:$0xff]   ;;  %v641_v11 = vld [vmem:[%s845_s1 + $0x90] sm:$0xff]  }
   0x5   :  { %578 = vmatpush3.bf16.msra.mxu1 %v633_v3  ;;  %557 = vmatprep.subr.bf16.mxu0 %v634_v4  ;;  %v642_v12 = vld [vmem:[%s845_s1 + $0x58] sm:$0xff]   ;;  %v646_v16 = vld [vmem:[%s845_s1 + $0x60] sm:$0xff]   ;;  %v650_v20 = vld [vmem:[%s845_s1 + $0x68] sm:$0xff]  }
   0x6   :  { %579 = vmatprep.subr.bf16.mxu1 %v635_v5  ;;  %v643_v13 = vld [vmem:[%s845_s1 + $0xd8] sm:$0xff]   ;;  %v647_v17 = vld [vmem:[%s845_s1 + $0xe0] sm:$0xff]   ;;  %v651_v21 = vld [vmem:[%s845_s1 + $0xe8] sm:$0xff]  }
   0x7   :  { %v644_v14 = vld [vmem:[%s845_s1 + $0x18] sm:$0xff]   ;;  %v648_v18 = vld [vmem:[%s845_s1 + $0x20] sm:$0xff]   ;;  %v652_v22 = vld [vmem:[%s845_s1 + $0x28] sm:$0xff]  }
   0x8   :  { %558 = vmatpush3.bf16.msra.mxu0 %v636_v6  ;;  %v645_v15 = vld [vmem:[%s845_s1 + $0x98] sm:$0xff]   ;;  %v649_v19 = vld [vmem:[%s845_s1 + $0xa0] sm:$0xff]   ;;  %v653_v23 = vld [vmem:[%s845_s1 + $0xa8] sm:$0xff]  }
   0x9   :  { %580 = vmatpush3.bf16.msra.mxu1 %v637_v7  ;;  %559 = vmatprep.subr.bf16.mxu0 %v638_v8  ;;  %v654_v24 = vld [vmem:[%s845_s1 + $0x70] sm:$0xff]   ;;  %v658_v28 = vld [vmem:[%s845_s1 + $0x78] sm:$0xff]   ;;  %v21_v32 = vld [vmem:[%s846_s0] sm:$0xff] }
   0xa   :  { %581 = vmatprep.subr.bf16.mxu1 %v639_v9  ;;  %v655_v25 = vld [vmem:[%s845_s1 + $0xf0] sm:$0xff]   ;;  %v659_v29 = vld [vmem:[%s845_s1 + $0xf8] sm:$0xff]   ;;  %v22_v33 = vld [vmem:[%s846_s0 + $0x8] sm:$0xff]  ;;  %v510_v34 = vcombine.low %v21_v32, %v21_v32  ;;  %v511_v35 = vcombine.high %v21_v32, %v21_v32 }
   0xb   :  { %v656_v26 = vld [vmem:[%s845_s1 + $0x30] sm:$0xff]   ;;  %v660_v30 = vld [vmem:[%s845_s1 + $0x38] sm:$0xff]   ;;  %v512_v36 = vcombine.low %v22_v33, %v22_v33  ;;  %v513_v37 = vcombine.high %v22_v33, %v22_v33  ;;  %v666_v38 = vld [vmem:[%s847_s3] sm:$0xff]  }
   0xc   :  { %560 = vmatpush3.bf16.msra.mxu0 %v640_v10  ;;  %v657_v27 = vld [vmem:[%s845_s1 + $0xb0] sm:$0xff]   ;;  %v661_v31 = vld [vmem:[%s845_s1 + $0xb8] sm:$0xff]   ;;  %332 = vmatprep.mubr.bf16.mxu0 %v511_v35  ;;  %v667_v40 = vld [vmem:[%s847_s3 + $0x8] sm:$0xff]  }
   0xd   :  { %582 = vmatpush3.bf16.msra.mxu1 %v641_v11  ;;  %561 = vmatprep.subr.bf16.mxu0 %v642_v12  ;;  %v668_v41 = vld [vmem:[%s847_s3 + $0x10] sm:$0xff]   ;;  %v669_v42 = vld [vmem:[%s847_s3 + $0x18] sm:$0xff]   ;;  %v670_v43 = vld [vmem:[%s847_s3 + $0x20] sm:$0xff]  }
   0xe   :  { %583 = vmatprep.subr.bf16.mxu1 %v643_v13  ;;  %372 = vmatprep.mubr.bf16.mxu1 %v513_v37  ;;  %v671_v44 = vld [vmem:[%s847_s3 + $0x28] sm:$0xff]   ;;  %v672_v45 = vld [vmem:[%s847_s3 + $0x30] sm:$0xff]   ;;  %v673_v46 = vld [vmem:[%s847_s3 + $0x38] sm:$0xff]  }
   0xf   :  { %v509_v49 = vld [vmem:[%s848_s2] ss:$0 sm:$0xff] }
  0x10   :  { %562 = vmatpush3.bf16.msra.mxu0 %v644_v14  ;;  %v546_v62 = vld [vmem:[%s849_s4] ss:$0 sm:$0xff] }
  0x11   :  { %584 = vmatpush3.bf16.msra.mxu1 %v645_v15  ;;  %563 = vmatprep.subr.bf16.mxu0 %v646_v16 }
  0x12   :  { %585 = vmatprep.subr.bf16.mxu1 %v647_v17 }
  0x14   :  { %564 = vmatpush3.bf16.msra.mxu0 %v648_v18 }
  0x15   :  { %586 = vmatpush3.bf16.msra.mxu1 %v649_v19  ;;  %565 = vmatprep.subr.bf16.mxu0 %v650_v20 }
  0x16   :  { %587 = vmatprep.subr.bf16.mxu1 %v651_v21 }
  0x18   :  { %566 = vmatpush3.bf16.msra.mxu0 %v652_v22 }
  0x19   :  { %588 = vmatpush3.bf16.msra.mxu1 %v653_v23  ;;  %567 = vmatprep.subr.bf16.mxu0 %v654_v24 }
  0x1a   :  { %589 = vmatprep.subr.bf16.mxu1 %v655_v25 }
  0x1c   :  { %568 = vmatpush3.bf16.msra.mxu0 %v656_v26 }
  0x1d   :  { %590 = vmatpush3.bf16.msra.mxu1 %v657_v27  ;;  %569 = vmatprep.subr.bf16.mxu0 %v658_v28 }
  0x1e   :  { %591 = vmatprep.subr.bf16.mxu1 %v659_v29 }
  0x20   :  { %570 = vmatpush3.bf16.msra.mxu0 %v660_v30 }
  0x21   :  { %592 = vmatpush3.bf16.msra.mxu1 %v661_v31  ;;  %608 = vmatprep.subr.bf16.mxu0 %v678_v39 }
  0x23   :  { %333 = vmatmul.mubr.bf16.vlgmr.msra.gmra.mrb[0].mxu0 %v510_v34 }
  0x24   :  { %373 = vmatmul.mubr.bf16.vlgmr.msra.gmra.mrb[0].mxu1 %v512_v36  ;;  %609 = vmatpush3.bf16.msra.mxu0 %v666_v38 }
  0x25   :  { %610 = vmatprep.subr.bf16.mxu0 %v678_v39  ;;  %624 = vmatprep.mubr.msk.bf16.mxu0 %vm679_vm0, %v678_v39 }
  0x28   :  { %611 = vmatpush3.bf16.msra.mxu0 %v667_v40 }
  0x29   :  { %612 = vmatprep.subr.bf16.mxu0 %v678_v39 }
  0x2c   :  { %613 = vmatpush3.bf16.msra.mxu0 %v668_v41 }
  0x2d   :  { %614 = vmatprep.subr.bf16.mxu0 %v678_v39 }
  0x30   :  { %615 = vmatpush3.bf16.msra.mxu0 %v669_v42 }
  0x31   :  { %616 = vmatprep.subr.bf16.mxu0 %v678_v39 }
  0x34   :  { %617 = vmatpush3.bf16.msra.mxu0 %v670_v43 }
  0x35   :  { %618 = vmatprep.subr.bf16.mxu0 %v678_v39 }
  0x38   :  { %619 = vmatpush3.bf16.msra.mxu0 %v671_v44 }
  0x39   :  { %620 = vmatprep.subr.bf16.mxu0 %v678_v39 }
  0x3c   :  { %621 = vmatpush3.bf16.msra.mxu0 %v672_v45 }
  0x3d   :  { %622 = vmatprep.subr.bf16.mxu0 %v678_v39 }
  0x40   :  { %623 = vmatpush3.bf16.msra.mxu0 %v673_v46 }
  0xf6   :  { %v571_v47 = vpop.f32.mrb[0].mxu0 }
  0xf7   :  { %v593_v48 = vpop.f32.mrb[0].mxu1  ;;  %v572_v50 = vpop.f32.mrb[1].mxu0 }
  0xf8   :  { %v594_v51 = vpop.f32.mrb[1].mxu1  ;;  %v573_v52 = vadd.f32 %v572_v50, %v571_v47  ;;  %v574_v54 = vpop.f32.mrb[2].mxu0 }
  0xf9   :  { %v595_v53 = vadd.f32 %v594_v51, %v593_v48  ;;  %v596_v55 = vpop.f32.mrb[2].mxu1  ;;  %v575_v56 = vpop.f32.mrb[3].mxu0 }
  0xfa   :  { %v597_v57 = vpop.f32.mrb[3].mxu1  ;;  %v335_v58 = vadd.f32 %v573_v52, %v509_v49 }
  0xfc   :  { %v375_v59 = vadd.f32 %v595_v53, %v335_v58 }
  0xfe   :  { %v380_v60 = vmax.f32 %v375_v59, 0.0 }
 0x100   :  { %v381_v61 = vpack.c.bf16 %v380_v60, %v380_v60 }
 0x102   :  { %625 = vmatmul.mubr.bf16.vlgmr.msra.gmra.mrb[4].mxu0 %v381_v61 }
 0x1d5   :  { %v487_v63 = vpop.f32.mrb[4].mxu0 }
 0x1d6   :  { %v488_v0 = vadd.f32 %v546_v62, %v487_v63  ;;  %v626_v1 = vpop.f32.mrb[5].mxu0 }
 0x1d7   :  { %v490_v2 = vpop.f32.mrb[6].mxu0 }
 0x1d8   :  { %493 = vmax.xlane.f32.xlu0 %v488_v0  ;;  %v627_v3 = vpop.f32.mrb[7].mxu0 }
 0x265   :  { %v494_v4 = vpop.xlane.xlu0 %493 }
 0x266   :  { %v495_v5 = vsub.f32 %v488_v0, %v494_v4 }
 0x268   :  { %v496_v6 = vmul.f32 1.442695, %v495_v5 }
 0x26a   :  { %674 = vpow2.f32 %v496_v6 }
 0x274   :  { %v675_v7 = vpop.eup %674 }
 0x275   :  { %498 = vadd.xlane.f32.xlu0 %v675_v7 }
 0x302   :  { %v499_v8 = vpop.xlane.xlu0 %498 }
 0x303   :  { %676 = vlog2.f32 %v499_v8 }
 0x30d   :  { %v677_v9 = vpop.eup %676 }
 0x30e   :  { %v501_v10 = vmul.f32 0.6931472, %v677_v9 }
 0x310   :  { %v502_v11 = vadd.f32 %v501_v10, %v494_v4 }
 0x312   :  { %v503_v12 = vsub.f32 %v488_v0, %v502_v11 }
 0x314   :  { %504 = vst [vmem:[%s850_s5] sm:$0xff] %v503_v12 }

// kernel: net_forward.2
= control target key start
LH: loop header
LB: loop body
LE: loop exit
PB: predicated region body
PF: predicated region fallthrough
CT: control target
= control target key end

     0   :  { %vm303_vm0 = vcmask 97280   ;;  %vm352_vm1 = vcmask 1045504   ;;  %vm655_vm2 = vcmask 1046528   ;;  %vm753_vm3 = vcmask 1043456   ;;  %s2680_s1 = inlined_call_operand.vmem [shape: bf16[140,256], index: 1, kind: input, shape index: {}]   ;;  %s2681_s0 = inlined_call_operand.vmem [shape: bf16[256,140], index: 0, kind: input, shape index: {}]   ;;  %s2682_s3 = inlined_call_operand.vmem [shape: bf16[640,256], index: 3, kind: input, shape index: {}]   ;;  %s2683_s2 = inlined_call_operand.vmem [shape: f32[1,128], index: 2, kind: input, shape index: {}]   ;;  %s2684_s4 = inlined_call_operand.vmem [shape: f32[1,128], index: 4, kind: input, shape index: {}]   ;;  %s2685_s5 = inlined_call_operand.vmem [shape: bf16[64,128], index: 5, kind: output, shape index: {}]  }
   0x1   :  { %v1817_v0 = vld [vmem:[%s2680_s1 + $0x4] ss:$8 sps:$4 sm:$0xff]   ;;  %v1819_v1 = vld [vmem:[%s2680_s1] ss:$8 sps:$4 sm:$0xff]   ;;  %v1820_v2 = vld [vmem:[%s2680_s1 + $0x14] ss:$8 sps:$4 sm:$0xff]  }
   0x2   :  { %359 = vmatprep.subr.bf16.mxu0 %v1817_v0  ;;  %v1822_v3 = vld [vmem:[%s2680_s1 + $0x10] ss:$8 sps:$4 sm:$0xff]   ;;  %v1823_v4 = vld [vmem:[%s2680_s1 + $0x24] ss:$8 sps:$4 sm:$0xff]   ;;  %v1825_v5 = vld [vmem:[%s2680_s1 + $0x20] ss:$8 sps:$4 sm:$0xff]  }
   0x3   :  { %360 = vmatpush1.bf16.msra.mxu0 %v1819_v1  ;;  %v1826_v6 = vld [vmem:[%s2680_s1 + $0x34] ss:$8 sps:$4 sm:$0xff]   ;;  %v1828_v7 = vld [vmem:[%s2680_s1 + $0x30] ss:$8 sps:$4 sm:$0xff]   ;;  %v1829_v8 = vld [vmem:[%s2680_s1 + $0x44] ss:$8 sps:$4 sm:$0xff]  }
   0x4   :  { %361 = vmatprep.subr.bf16.mxu0 %v1820_v2  ;;  %v1846_v9 = vld [vmem:[%s2681_s0 + $0x4] ss:$8 sps:$4 sm:$0xff]   ;;  %v1831_v10 = vld [vmem:[%s2680_s1 + $0x40] ss:$8 sps:$4 sm:$0xff]   ;;  %v1832_v11 = vld [vmem:[%s2680_s1 + $0x54] ss:$8 sps:$4 sm:$0xff]  }
   0x5   :  { %1631 = vmatprep.mubr.msk.bf16.mxu0 %vm303_vm0, %v1846_v9  ;;  %v1834_v12 = vld [vmem:[%s2680_s1 + $0x50] ss:$8 sps:$4 sm:$0xff]   ;;  %v1835_v13 = vld [vmem:[%s2680_s1 + $0x64] ss:$8 sps:$4 sm:$0xff]   ;;  %v1837_v14 = vld [vmem:[%s2680_s1 + $0x60] ss:$8 sps:$4 sm:$0xff]  }
   0x6   :  { %v1838_v15 = vld [vmem:[%s2680_s1 + $0x74] ss:$8 sps:$4 sm:$0xff]   ;;  %v1840_v16 = vld [vmem:[%s2680_s1 + $0x70] ss:$8 sps:$4 sm:$0xff]   ;;  %v1844_v20 = vld [vmem:[%s2681_s0] ss:$8 sps:$4 sm:$0xff]  }
   0x7   :  { %362 = vmatpush1.bf16.msra.mxu0 %v1822_v3  ;;  %v1841_v17 = vld [vmem:[%s2680_s1 + $0x84] ss:$8 sps:$4 sm:$0x3f]   ;;  %v1843_v18 = vld [vmem:[%s2680_s1 + $0x80] ss:$8 sps:$4 sm:$0x3f]  }
   0x8   :  { %363 = vmatprep.subr.bf16.mxu0 %v1823_v4  ;;  %v354_v19 = vsel %vm352_vm1, %v1843_v18, 0  ;;  %v1892_v21 = vld [vmem:[%s2682_s3 + $0x4] ss:$8 sps:$4 sm:$0xff]   ;;  %v1894_v22 = vld [vmem:[%s2682_s3] ss:$8 sps:$4 sm:$0xff]   ;;  %vm720_vm4 = vcmask 1044480  }
   0x9   :  { %v1847_v23 = vld [vmem:[%s2681_s0 + $0x14] ss:$8 sps:$4 sm:$0xff]   ;;  %1286 = vmatprep.subr.bf16.mxu1 %v1892_v21  ;;  %v1897_v25 = vld [vmem:[%s2682_s3 + $0x10] ss:$8 sps:$4 sm:$0xff]   ;;  %v1898_v26 = vld [vmem:[%s2682_s3 + $0x24] ss:$8 sps:$4 sm:$0xff]  }
   0xa   :  { %v1895_v24 = vld [vmem:[%s2682_s3 + $0x14] ss:$8 sps:$4 sm:$0xff]   ;;  %1287 = vmatpush1.bf16.msra.mxu1 %v1894_v22  ;;  %v1849_v27 = vld [vmem:[%s2681_s0 + $0x10] ss:$8 sps:$4 sm:$0xff]   ;;  %v1900_v28 = vld [vmem:[%s2682_s3 + $0x20] ss:$8 sps:$4 sm:$0xff]  }
   0xb   :  { %364 = vmatpush1.bf16.msra.mxu0 %v1825_v5  ;;  %1288 = vmatprep.subr.bf16.mxu1 %v1895_v24  ;;  %v1850_v29 = vld [vmem:[%s2681_s0 + $0x24] ss:$8 sps:$4 sm:$0xff]   ;;  %v1901_v30 = vld [vmem:[%s2682_s3 + $0x34] ss:$8 sps:$4 sm:$0xff]   ;;  %v1903_v31 = vld [vmem:[%s2682_s3 + $0x30] ss:$8 sps:$4 sm:$0xff]  }
   0xc   :  { %365 = vmatprep.subr.bf16.mxu0 %v1826_v6  ;;  %v1904_v32 = vld [vmem:[%s2682_s3 + $0x44] ss:$8 sps:$4 sm:$0xff]   ;;  %v1906_v33 = vld [vmem:[%s2682_s3 + $0x40] ss:$8 sps:$4 sm:$0xff]   ;;  %v1907_v35 = vld [vmem:[%s2682_s3 + $0x54] ss:$8 sps:$4 sm:$0xff]  }
   0xd   :  { %v1852_v34 = vld [vmem:[%s2681_s0 + $0x20] ss:$8 sps:$4 sm:$0xff]   ;;  %v1853_v36 = vld [vmem:[%s2681_s0 + $0x34] ss:$8 sps:$4 sm:$0xff]   ;;  %v1909_v37 = vld [vmem:[%s2682_s3 + $0x50] ss:$8 sps:$4 sm:$0xff]  }
   0xe   :  { %1289 = vmatpush1.bf16.msra.mxu1 %v1897_v25  ;;  %v1855_v38 = vld [vmem:[%s2681_s0 + $0x30] ss:$8 sps:$4 sm:$0xff]   ;;  %v1856_v39 = vld [vmem:[%s2681_s0 + $0x44] ss:$8 sps:$4 sm:$0xff]   ;;  %v1858_v40 = vld [vmem:[%s2681_s0 + $0x40] ss:$8 sps:$4 sm:$0xff]  }
   0xf   :  { %366 = vmatpush1.bf16.msra.mxu0 %v1828_v7  ;;  %1290 = vmatprep.subr.bf16.mxu1 %v1898_v26  ;;  %v1859_v41 = vld [vmem:[%s2681_s0 + $0x54] ss:$8 sps:$4 sm:$0xff]   ;;  %v1861_v42 = vld [vmem:[%s2681_s0 + $0x50] ss:$8 sps:$4 sm:$0xff]   ;;  %v1862_v43 = vld [vmem:[%s2681_s0 + $0x64] ss:$8 sps:$4 sm:$0xff]  }
  0x10   :  { %367 = vmatprep.subr.bf16.mxu0 %v1829_v8  ;;  %v1864_v44 = vld [vmem:[%s2681_s0 + $0x60] ss:$8 sps:$4 sm:$0xff]   ;;  %v1865_v45 = vld [vmem:[%s2681_s0 + $0x74] ss:$8 sps:$4 sm:$0xff]   ;;  %v1867_v46 = vld [vmem:[%s2681_s0 + $0x70] ss:$8 sps:$4 sm:$0xff]  }
  0x11   :  { %v1868_v47 = vld [vmem:[%s2681_s0 + $0x84] ss:$8 sps:$4 sm:$0xff]   ;;  %v1870_v48 = vld [vmem:[%s2681_s0 + $0x80] ss:$8 sps:$4 sm:$0xff]   ;;  %v1871_v49 = vld [vmem:[%s2681_s0 + $0x94] ss:$8 sps:$4 sm:$0xff]  }
  0x12   :  { %1291 = vmatpush1.bf16.msra.mxu1 %v1900_v28  ;;  %v1873_v50 = vld [vmem:[%s2681_s0 + $0x90] ss:$8 sps:$4 sm:$0xff]   ;;  %v1874_v51 = vld [vmem:[%s2681_s0 + $0xa4] ss:$8 sps:$4 sm:$0xff]   ;;  %v1876_v52 = vld [vmem:[%s2681_s0 + $0xa0] ss:$8 sps:$4 sm:$0xff]  }
  0x13   :  { %368 = vmatpush1.bf16.msra.mxu0 %v1831_v10  ;;  %1292 = vmatprep.subr.bf16.mxu1 %v1901_v30  ;;  %v1877_v53 = vld [vmem:[%s2681_s0 + $0xb4] ss:$8 sps:$4 sm:$0xff]   ;;  %v1910_v54 = vld [vmem:[%s2682_s3 + $0x64] ss:$8 sps:$4 sm:$0xff]   ;;  %v1879_v55 = vld [vmem:[%s2681_s0 + $0xb0] ss:$8 sps:$4 sm:$0xff]  }
  0x14   :  { %369 = vmatprep.subr.bf16.mxu0 %v1832_v11  ;;  %v1912_v56 = vld [vmem:[%s2682_s3 + $0x60] ss:$8 sps:$4 sm:$0xff]   ;;  %v1880_v57 = vld [vmem:[%s2681_s0 + $0xc4] ss:$8 sps:$4 sm:$0xff]   ;;  %v1913_v58 = vld [vmem:[%s2682_s3 + $0x74] ss:$8 sps:$4 sm:$0xff]  }
  0x15   :  { %v1915_v59 = vld [vmem:[%s2682_s3 + $0x70] ss:$8 sps:$4 sm:$0xff]   ;;  %v2238_v60 = vld [vmem:[%s2682_s3 + $0x204] ss:$8 sps:$4 sm:$0xff]   ;;  %v2243_v61 = vld [vmem:[%s2682_s3 + $0x200] ss:$8 sps:$4 sm:$0xff]  }
  0x16   :  { %1293 = vmatpush1.bf16.msra.mxu1 %v1903_v31  ;;  %v1919_v62 = vld [vmem:[%s2682_s3 + $0x84] ss:$8 sps:$4 sm:$0xff]   ;;  %v1882_v63 = vld [vmem:[%s2681_s0 + $0xc0] ss:$8 sps:$4 sm:$0xff]   ;;  %v1883_v1 = vld [vmem:[%s2681_s0 + $0xd4] ss:$8 sps:$4 sm:$0xff]  }
  0x17   :  { %370 = vmatpush1.bf16.msra.mxu0 %v1834_v12  ;;  %1294 = vmatprep.subr.bf16.mxu1 %v1904_v32  ;;  %v1921_v0 = vld [vmem:[%s2682_s3 + $0x80] ss:$8 sps:$4 sm:$0xff]   ;;  %v2262_v2 = vld [vmem:[%s2682_s3 + $0x214] ss:$8 sps:$4 sm:$0xff]   ;;  %v2267_v3 = vld [vmem:[%s2682_s3 + $0x210] ss:$8 sps:$4 sm:$0xff]  }
  0x18   :  { %371 = vmatprep.subr.bf16.mxu0 %v1835_v13  ;;  %v1925_v4 = vld [vmem:[%s2682_s3 + $0x94] ss:$8 sps:$4 sm:$0xff]   ;;  %v1927_v5 = vld [vmem:[%s2682_s3 + $0x90] ss:$8 sps:$4 sm:$0xff]   ;;  %v2281_v6 = vld [vmem:[%s2682_s3 + $0x224] ss:$8 sps:$4 sm:$0xff]  }
  0x19   :  { %v2286_v7 = vld [vmem:[%s2682_s3 + $0x220] ss:$8 sps:$4 sm:$0xff]   ;;  %v1931_v8 = vld [vmem:[%s2682_s3 + $0xa4] ss:$8 sps:$4 sm:$0xff]   ;;  %v1885_v9 = vld [vmem:[%s2681_s0 + $0xd0] ss:$8 sps:$4 sm:$0xff]  }
  0x1a   :  { %1295 = vmatpush1.bf16.msra.mxu1 %v1906_v33  ;;  %v1933_v10 = vld [vmem:[%s2682_s3 + $0xa0] ss:$8 sps:$4 sm:$0xff]   ;;  %v1886_v11 = vld [vmem:[%s2681_s0 + $0xe4] ss:$8 sps:$4 sm:$0xff]   ;;  %v2305_v12 = vld [vmem:[%s2682_s3 + $0x234] ss:$8 sps:$4 sm:$0xff]  }
  0x1b   :  { %372 = vmatpush1.bf16.msra.mxu0 %v1837_v14  ;;  %1296 = vmatprep.subr.bf16.mxu1 %v1907_v35  ;;  %v2310_v13 = vld [vmem:[%s2682_s3 + $0x230] ss:$8 sps:$4 sm:$0xff]   ;;  %v1937_v14 = vld [vmem:[%s2682_s3 + $0xb4] ss:$8 sps:$4 sm:$0xff]   ;;  %v1943_v18 = vld [vmem:[%s2682_s3 + $0xc4] ss:$8 sps:$4 sm:$0xff]  }
  0x1c   :  { %373 = vmatprep.subr.bf16.mxu0 %v1838_v15  ;;  %v1939_v15 = vld [vmem:[%s2682_s3 + $0xb0] ss:$8 sps:$4 sm:$0xff]   ;;  %v1889_v21 = vld [vmem:[%s2681_s0 + $0xf4] ss:$8 sps:$4 sm:$0xff]   ;;  %v2367_v26 = vld [vmem:[%s2682_s3 + $0x264] ss:$8 sps:$4 sm:$0xff]  }
  0x1d   :  { %v2348_v22 = vld [vmem:[%s2682_s3 + $0x254] ss:$8 sps:$4 sm:$0xff]   ;;  %v1951_v25 = vld [vmem:[%s2682_s3 + $0xd0] ss:$8 sps:$4 sm:$0xff]   ;;  %v1955_v28 = vld [vmem:[%s2682_s3 + $0xe4] ss:$8 sps:$4 sm:$0xff]  }
  0x1e   :  { %1297 = vmatpush1.bf16.msra.mxu1 %v1909_v37  ;;  %v1949_v24 = vld [vmem:[%s2682_s3 + $0xd4] ss:$8 sps:$4 sm:$0xff]   ;;  %v1957_v30 = vld [vmem:[%s2682_s3 + $0xe0] ss:$8 sps:$4 sm:$0xff]   ;;  %v2393_v32 = vld [vmem:[%s2682_s3 + $0x270] ss:$8 sps:$4 sm:$0xff]  }
  0x1f   :  { %374 = vmatpush1.bf16.msra.mxu0 %v1840_v16  ;;  %1298 = vmatprep.subr.bf16.mxu1 %v1910_v54  ;;  %v2324_v16 = vld [vmem:[%s2682_s3 + $0x244] ss:$8 sps:$4 sm:$0xff]   ;;  %v2388_v31 = vld [vmem:[%s2682_s3 + $0x274] ss:$8 sps:$4 sm:$0xff]   ;;  %v2686_v35 = vmov 0  }
  0x20   :  { %1630 = vmatprep.subr.msk.bf16.mxu0 %vm352_vm1, %v1841_v17  ;;  %v2329_v17 = vld [vmem:[%s2682_s3 + $0x240] ss:$8 sps:$4 sm:$0xff]   ;;  %v1961_v33 = vld [vmem:[%s2682_s3 + $0xf4] ss:$8 sps:$4 sm:$0xff]  }
  0x22   :  { %1299 = vmatpush1.bf16.msra.mxu1 %v1912_v56 }
  0x23   :  { %376 = vmatpush1.bf16.msra.mxu0 %v354_v19  ;;  %1300 = vmatprep.subr.bf16.mxu1 %v1913_v58  ;;  %v1888_v19 = vld [vmem:[%s2681_s0 + $0xe0] ss:$8 sps:$4 sm:$0xff]  }
  0x24   :  { %1432 = vmatprep.subr.bf16.mxu0 %v2238_v60 }
  0x26   :  { %392 = vmatmul.mubr.bf16.vlgmr.msra.gmra.mrb[0].mxu0 %v1844_v20  ;;  %1301 = vmatpush1.bf16.msra.mxu1 %v1915_v59  ;;  %v1945_v20 = vld [vmem:[%s2682_s3 + $0xc0] ss:$8 sps:$4 sm:$0xff]  }
  0x27   :  { %1632 = vmatprep.mubr.msk.bf16.mxu0 %vm303_vm0, %v1847_v23  ;;  %1302 = vmatprep.subr.bf16.mxu1 %v1919_v62  ;;  %v2353_v23 = vld [vmem:[%s2682_s3 + $0x250] ss:$8 sps:$4 sm:$0xff]  }
  0x28   :  { %1433 = vmatpush1.bf16.msra.mxu0 %v2243_v61 }
  0x29   :  { %1434 = vmatprep.subr.bf16.mxu0 %v2262_v2 }
  0x2a   :  { %1303 = vmatpush1.bf16.msra.mxu1 %v1921_v0 }
  0x2b   :  { %1304 = vmatprep.subr.bf16.mxu1 %v1925_v4 }
  0x2c   :  { %1435 = vmatpush1.bf16.msra.mxu0 %v2267_v3 }
  0x2d   :  { %1436 = vmatprep.subr.bf16.mxu0 %v2281_v6 }
  0x2e   :  { %402 = vmatmul.mubr.bf16.gmra.mrb[4].mxu0 %v1849_v27  ;;  %1305 = vmatpush1.bf16.msra.mxu1 %v1927_v5  ;;  %v2372_v27 = vld [vmem:[%s2682_s3 + $0x260] ss:$8 sps:$4 sm:$0xff]  }
  0x2f   :  { %1633 = vmatprep.mubr.msk.bf16.mxu0 %vm303_vm0, %v1850_v29  ;;  %1306 = vmatprep.subr.bf16.mxu1 %v1931_v8  ;;  %v1891_v29 = vld [vmem:[%s2681_s0 + $0xf0] ss:$8 sps:$4 sm:$0xff]  }
  0x30   :  { %1437 = vmatpush1.bf16.msra.mxu0 %v2286_v7 }
  0x31   :  { %1438 = vmatprep.subr.bf16.mxu0 %v2305_v12 }
  0x32   :  { %1307 = vmatpush1.bf16.msra.mxu1 %v1933_v10 }
  0x33   :  { %1308 = vmatprep.subr.bf16.mxu1 %v1937_v14 }
  0x34   :  { %1439 = vmatpush1.bf16.msra.mxu0 %v2310_v13 }
  0x35   :  { %1440 = vmatprep.subr.bf16.mxu0 %v2324_v16 }
  0x36   :  { %412 = vmatmul.mubr.bf16.gmra.mrb[8].mxu0 %v1852_v34  ;;  %1309 = vmatpush1.bf16.msra.mxu1 %v1939_v15  ;;  %v1963_v34 = vld [vmem:[%s2682_s3 + $0xf0] ss:$8 sps:$4 sm:$0xff]  }
  0x37   :  { %1634 = vmatprep.mubr.msk.bf16.mxu0 %vm303_vm0, %v1853_v36  ;;  %1310 = vmatprep.subr.bf16.mxu1 %v1943_v18  ;;  %v1966_v36 = vld [vmem:[%s2682_s3 + $0x104] ss:$8 sps:$4 sm:$0xff]  }
  0x38   :  { %1441 = vmatpush1.bf16.msra.mxu0 %v2329_v17 }
  0x39   :  { %1442 = vmatprep.subr.bf16.mxu0 %v2348_v22 }
  0x3a   :  { %1311 = vmatpush1.bf16.msra.mxu1 %v1945_v20 }
  0x3b   :  { %1312 = vmatprep.subr.bf16.mxu1 %v1949_v24 }
  0x3c   :  { %1443 = vmatpush1.bf16.msra.mxu0 %v2353_v23 }
  0x3d   :  { %1444 = vmatprep.subr.bf16.mxu0 %v2367_v26 }
  0x3e   :  { %422 = vmatmul.mubr.bf16.gmra.mrb[12].mxu0 %v1855_v38  ;;  %1313 = vmatpush1.bf16.msra.mxu1 %v1951_v25 }
  0x3f   :  { %1635 = vmatprep.mubr.msk.bf16.mxu0 %vm303_vm0, %v1856_v39  ;;  %1314 = vmatprep.subr.bf16.mxu1 %v1955_v28 }
  0x40   :  { %1445 = vmatpush1.bf16.msra.mxu0 %v2372_v27 }
  0x41   :  { %1446 = vmatprep.subr.bf16.mxu0 %v2388_v31 }
  0x42   :  { %1315 = vmatpush1.bf16.msra.mxu1 %v1957_v30 }
  0x43   :  { %1316 = vmatprep.subr.bf16.mxu1 %v1961_v33 }
  0x44   :  { %1447 = vmatpush1.bf16.msra.mxu0 %v2393_v32 }
  0x46   :  { %432 = vmatmul.mubr.bf16.gmra.mrb[16].mxu0 %v1858_v40  ;;  %1317 = vmatpush1.bf16.msra.mxu1 %v1963_v34 }
  0x47   :  { %1636 = vmatprep.mubr.msk.bf16.mxu0 %vm303_vm0, %v1859_v41  ;;  %1359 = vmatprep.subr.bf16.mxu1 %v1966_v36 }
  0x4e   :  { %442 = vmatmul.mubr.bf16.gmra.mrb[20].mxu0 %v1861_v42 }
  0x4f   :  { %1637 = vmatprep.mubr.msk.bf16.mxu0 %vm303_vm0, %v1862_v43 }
  0x56   :  { %452 = vmatmul.mubr.bf16.gmra.mrb[24].mxu0 %v1864_v44 }
  0x57   :  { %1638 = vmatprep.mubr.msk.bf16.mxu0 %vm303_vm0, %v1865_v45 }
  0x5e   :  { %462 = vmatmul.mubr.bf16.gmra.mrb[28].mxu0 %v1867_v46  ;;  %v2410_v46 = vld [vmem:[%s2683_s2] ss:$0 sm:$0xff] }
  0x5f   :  { %1639 = vmatprep.mubr.msk.bf16.mxu0 %vm303_vm0, %v1868_v47 }
  0x66   :  { %472 = vmatmul.mubr.bf16.gmra.mrb[32].mxu0 %v1870_v48 }
  0x67   :  { %1640 = vmatprep.mubr.msk.bf16.mxu0 %vm303_vm0, %v1871_v49 }
  0x6e   :  { %482 = vmatmul.mubr.bf16.gmra.mrb[36].mxu0 %v1873_v50 }
  0x6f   :  { %1641 = vmatprep.mubr.msk.bf16.mxu0 %vm303_vm0, %v1874_v51 }
  0x76   :  { %492 = vmatmul.mubr.bf16.gmra.mrb[40].mxu0 %v1876_v52 }
  0x77   :  { %1642 = vmatprep.mubr.msk.bf16.mxu0 %vm303_vm0, %v1877_v53 }
  0x7e   :  { %502 = vmatmul.mubr.bf16.gmra.mrb[44].mxu0 %v1879_v55 }
  0x7f   :  { %1643 = vmatprep.mubr.msk.bf16.mxu0 %vm303_vm0, %v1880_v57 }
  0x86   :  { %512 = vmatmul.mubr.bf16.gmra.mrb[48].mxu0 %v1882_v63 }
  0x87   :  { %1644 = vmatprep.mubr.msk.bf16.mxu0 %vm303_vm0, %v1883_v1 }
  0x8e   :  { %522 = vmatmul.mubr.bf16.gmra.mrb[52].mxu0 %v1885_v9 }
  0x8f   :  { %1645 = vmatprep.mubr.msk.bf16.mxu0 %vm303_vm0, %v1886_v11 }
  0x96   :  { %532 = vmatmul.mubr.bf16.gmra.mrb[56].mxu0 %v1888_v19 }
  0x97   :  { %1646 = vmatprep.mubr.msk.bf16.mxu0 %vm303_vm0, %v1889_v21 }
  0x9e   :  { %542 = vmatmul.mubr.bf16.gmra.mrb[60].mxu0 %v1891_v29 }
  0x9f   :  { %1464 = vmatprep.mubr.bf16.mxu0 %v2686_v35 }
  0xf9   :  { %v393_v37 = vpop.f32.mrb[0].mxu0 }
  0xfa   :  { %v395_v38 = vpop.f32.mrb[1].mxu0 }
  0xfb   :  { %v397_v39 = vpop.f32.mrb[2].mxu0 }
  0xfc   :  { %v399_v40 = vpop.f32.mrb[3].mxu0 }
 0x101   :  { %v403_v41 = vpop.f32.mrb[4].mxu0 }
 0x102   :  { %v552_v42 = vmax.f32 %v393_v37, %v403_v41  ;;  %v405_v43 = vpop.f32.mrb[5].mxu0 }
 0x103   :  { %v553_v44 = vmax.f32 %v395_v38, %v405_v43  ;;  %v407_v45 = vpop.f32.mrb[6].mxu0 }
 0x104   :  { %v554_v47 = vmax.f32 %v397_v39, %v407_v45  ;;  %v409_v48 = vpop.f32.mrb[7].mxu0 }
 0x105   :  { %v584_v49 = vmax.f32 %v552_v42, %v553_v44  ;;  %v555_v50 = vmax.f32 %v399_v40, %v409_v48 }
 0x107   :  { %v607_v51 = vadd.f32 %v2410_v46, %v584_v49  ;;  %v585_v52 = vmax.f32 %v554_v47, %v555_v50 }
 0x109   :  { %v2413_v53 = vmax.f32 %v607_v51, 0.0  ;;  %v608_v54 = vadd.f32 %v2410_v46, %v585_v52  ;;  %v413_v55 = vpop.f32.mrb[8].mxu0 }
 0x10a   :  { %v415_v56 = vpop.f32.mrb[9].mxu0 }
 0x10b   :  { %v624_v57 = vmax.f32 %v608_v54, 0.0  ;;  %v417_v58 = vpop.f32.mrb[10].mxu0  ;;  %v656_v62 = vrot.slane %v2413_v53, 1  ;;  %v754_v63 = vrot.slane %v2413_v53, 4  ;;  %v721_v0 = vrot.slane %v2413_v53, 3 }
 0x10c   :  { %v419_v59 = vpop.f32.mrb[11].mxu0  ;;  %v688_v1 = vrot.slane %v2413_v53, 2 }
 0x10d   :  { %v689_v4 = vrot.slane %v624_v57, 2  ;;  %v755_v5 = vrot.slane %v624_v57, 4  ;;  %v657_v8 = vrot.slane %v624_v57, 1  ;;  %v722_v9 = vrot.slane %v624_v57, 3 }
 0x10f   :  { %v658_v10 = vsel %vm655_vm2, %v656_v62, %v657_v8  ;;  %v756_v11 = vsel %vm753_vm3, %v754_v63, %v755_v5  ;;  %v2423_v14 = vsel %vm720_vm4, %v721_v0, %v722_v9  ;;  %v2426_v15 = vsel %vm352_vm1, %v688_v1, %v689_v4  ;;  %v1969_v1 = vld [vmem:[%s2682_s3 + $0x114] ss:$8 sps:$4 sm:$0xff]  }
 0x111   :  { %v423_v18 = vpop.f32.mrb[12].mxu0 }
 0x112   :  { %v556_v19 = vmax.f32 %v413_v55, %v423_v18  ;;  %v425_v20 = vpop.f32.mrb[13].mxu0  ;;  %v1967_v18 = vld [vmem:[%s2682_s3 + $0x110] ss:$8 sps:$4 sm:$0xff]  }
 0x113   :  { %v557_v21 = vmax.f32 %v415_v56, %v425_v20  ;;  %v427_v24 = vpop.f32.mrb[14].mxu0 }
 0x114   :  { %v558_v25 = vmax.f32 %v417_v58, %v427_v24  ;;  %v429_v28 = vpop.f32.mrb[15].mxu0 }
 0x115   :  { %v586_v29 = vmax.f32 %v556_v19, %v557_v21  ;;  %v559_v30 = vmax.f32 %v419_v59, %v429_v28  ;;  %v1964_v59 = vld [vmem:[%s2682_s3 + $0x100] ss:$8 sps:$4 sm:$0xff]   ;;  %v1972_v21 = vld [vmem:[%s2682_s3 + $0x124] ss:$8 sps:$4 sm:$0xff]  }
 0x116   :  { %v1970_v28 = vld [vmem:[%s2682_s3 + $0x120] ss:$8 sps:$4 sm:$0xff]  }
 0x117   :  { %v609_v33 = vadd.f32 %v2410_v46, %v586_v29  ;;  %v587_v34 = vmax.f32 %v558_v25, %v559_v30 }
 0x119   :  { %v625_v36 = vmax.f32 %v609_v33, 0.0  ;;  %v610_v37 = vadd.f32 %v2410_v46, %v587_v34  ;;  %v433_v38 = vpop.f32.mrb[16].mxu0  ;;  %v1975_v34 = vld [vmem:[%s2682_s3 + $0x134] ss:$8 sps:$4 sm:$0xff]  }
 0x11a   :  { %v435_v39 = vpop.f32.mrb[17].mxu0 }
 0x11b   :  { %v626_v40 = vmax.f32 %v610_v37, 0.0  ;;  %v437_v41 = vpop.f32.mrb[18].mxu0  ;;  %v786_v42 = vpack.c.bf16 %v625_v36, %v2413_v53  ;;  %v659_v44 = vrot.slane %v625_v36, 1  ;;  %v757_v45 = vrot.slane %v625_v36, 4 }
 0x11c   :  { %v439_v43 = vpop.f32.mrb[19].mxu0  ;;  %v724_v47 = vrot.slane %v625_v36, 3  ;;  %v691_v48 = vrot.slane %v625_v36, 2 }
 0x11d   :  { %v692_v49 = vrot.slane %v626_v40, 2  ;;  %v758_v50 = vrot.slane %v626_v40, 4  ;;  %v660_v51 = vrot.slane %v626_v40, 1  ;;  %v725_v52 = vrot.slane %v626_v40, 3 }
 0x11f   :  { %v661_v54 = vsel %vm655_vm2, %v659_v44, %v660_v51  ;;  %v759_v55 = vsel %vm753_vm3, %v757_v45, %v758_v50  ;;  %v2434_v56 = vsel %vm720_vm4, %v724_v47, %v725_v52  ;;  %v2437_v57 = vsel %vm352_vm1, %v691_v48, %v692_v49  ;;  %v1978_v48 = vld [vmem:[%s2682_s3 + $0x144] ss:$8 sps:$4 sm:$0xff]  }
 0x120   :  { %v787_v53 = vpack.c.bf16 %v661_v54, %v658_v10  ;;  %v790_v58 = vpack.c.bf16 %v759_v55, %v756_v11  ;;  %v789_v62 = vpack.c.bf16 %v2434_v56, %v2423_v14  ;;  %v788_v63 = vpack.c.bf16 %v2437_v57, %v2426_v15 }
 0x121   :  { %v443_v0 = vpop.f32.mrb[20].mxu0 }
 0x122   :  { %v560_v4 = vmax.f32 %v433_v38, %v443_v0  ;;  %v445_v5 = vpop.f32.mrb[21].mxu0  ;;  %1318 = vmatprep.mubr.bf16.mxu1 %v787_v53  ;;  %1465 = vmatmul.mubr.bf16.vlgmr.msra.gmra.mrb[64].mxu0 %v790_v58  ;;  %v1976_v53 = vld [vmem:[%s2682_s3 + $0x140] ss:$8 sps:$4 sm:$0xff]  }
 0x123   :  { %v561_v8 = vmax.f32 %v435_v39, %v445_v5  ;;  %v447_v9 = vpop.f32.mrb[22].mxu0  ;;  %1319 = vmatmul.mubr.bf16.vlgmr.msra.gmra.mrb[0].mxu1 %v786_v42  ;;  %v1973_v39 = vld [vmem:[%s2682_s3 + $0x130] ss:$8 sps:$4 sm:$0xff]  }
 0x124   :  { %v562_v10 = vmax.f32 %v437_v41, %v447_v9  ;;  %v449_v11 = vpop.f32.mrb[23].mxu0  ;;  %1360 = vmatpush1.bf16.msra.mxu1 %v1964_v59  ;;  %v1981_v59 = vld [vmem:[%s2682_s3 + $0x154] ss:$8 sps:$4 sm:$0xff]  }
 0x125   :  { %v588_v19 = vmax.f32 %v560_v4, %v561_v8  ;;  %v563_v20 = vmax.f32 %v439_v43, %v449_v11  ;;  %1361 = vmatprep.subr.bf16.mxu1 %v1969_v1 }
 0x127   :  { %v611_v24 = vadd.f32 %v2410_v46, %v588_v19  ;;  %v589_v25 = vmax.f32 %v562_v10, %v563_v20  ;;  %v1979_v10 = vld [vmem:[%s2682_s3 + $0x150] ss:$8 sps:$4 sm:$0xff]   ;;  %v1984_v19 = vld [vmem:[%s2682_s3 + $0x164] ss:$8 sps:$4 sm:$0xff]  }
 0x128   :  { %1362 = vmatpush1.bf16.msra.mxu1 %v1967_v18 }
 0x129   :  { %v2459_v29 = vmax.f32 %v611_v24, 0.0  ;;  %v612_v30 = vadd.f32 %v2410_v46, %v589_v25  ;;  %v453_v33 = vpop.f32.mrb[24].mxu0  ;;  %1363 = vmatprep.subr.bf16.mxu1 %v1972_v21  ;;  %v1982_v24 = vld [vmem:[%s2682_s3 + $0x160] ss:$8 sps:$4 sm:$0xff]  }
 0x12a   :  { %v455_v36 = vpop.f32.mrb[25].mxu0 }
 0x12b   :  { %v628_v37 = vmax.f32 %v612_v30, 0.0  ;;  %v457_v38 = vpop.f32.mrb[26].mxu0  ;;  %v662_v41 = vrot.slane %v2459_v29, 1  ;;  %v727_v42 = vrot.slane %v2459_v29, 3  ;;  %v694_v43 = vrot.slane %v2459_v29, 2 }
 0x12c   :  { %v459_v40 = vpop.f32.mrb[27].mxu0  ;;  %1364 = vmatpush1.bf16.msra.mxu1 %v1970_v28  ;;  %v760_v44 = vrot.slane %v2459_v29, 4 }
 0x12d   :  { %v761_v45 = vrot.slane %v628_v37, 4  ;;  %v663_v47 = vrot.slane %v628_v37, 1  ;;  %1365 = vmatprep.subr.bf16.mxu1 %v1975_v34  ;;  %v728_v49 = vrot.slane %v628_v37, 3  ;;  %v695_v50 = vrot.slane %v628_v37, 2 }
 0x12f   :  { %v664_v51 = vsel %vm655_vm2, %v662_v41, %v663_v47  ;;  %v2477_v52 = vsel %vm720_vm4, %v727_v42, %v728_v49  ;;  %v2480_v54 = vsel %vm352_vm1, %v694_v43, %v695_v50  ;;  %v2483_v55 = vsel %vm753_vm3, %v760_v44, %v761_v45 }
 0x130   :  { %1366 = vmatpush1.bf16.msra.mxu1 %v1973_v39  ;;  %v1985_v39 = vld [vmem:[%s2682_s3 + $0x170] ss:$8 sps:$4 sm:$0xff]  }
 0x131   :  { %v463_v58 = vpop.f32.mrb[28].mxu0  ;;  %1367 = vmatprep.subr.bf16.mxu1 %v1978_v48  ;;  %v1990_v48 = vld [vmem:[%s2682_s3 + $0x184] ss:$8 sps:$4 sm:$0xff]  }
 0x132   :  { %v564_v0 = vmax.f32 %v453_v33, %v463_v58  ;;  %v465_v1 = vpop.f32.mrb[29].mxu0  ;;  %v1987_v33 = vld [vmem:[%s2682_s3 + $0x174] ss:$8 sps:$4 sm:$0xff]  }
 0x133   :  { %v565_v4 = vmax.f32 %v455_v36, %v465_v1  ;;  %v467_v5 = vpop.f32.mrb[30].mxu0  ;;  %v1988_v1 = vld [vmem:[%s2682_s3 + $0x180] ss:$8 sps:$4 sm:$0xff]  }
 0x134   :  { %v566_v8 = vmax.f32 %v457_v38, %v467_v5  ;;  %v469_v9 = vpop.f32.mrb[31].mxu0  ;;  %1368 = vmatpush1.bf16.msra.mxu1 %v1976_v53 }
 0x135   :  { %v590_v11 = vmax.f32 %v564_v0, %v565_v4  ;;  %v567_v18 = vmax.f32 %v459_v40, %v469_v9  ;;  %1369 = vmatprep.subr.bf16.mxu1 %v1981_v59 }
 0x137   :  { %v613_v20 = vadd.f32 %v2410_v46, %v590_v11  ;;  %v591_v21 = vmax.f32 %v566_v8, %v567_v18 }
 0x138   :  { %1370 = vmatpush1.bf16.msra.mxu1 %v1979_v10 }
 0x139   :  { %v629_v25 = vmax.f32 %v613_v20, 0.0  ;;  %v614_v28 = vadd.f32 %v2410_v46, %v591_v21  ;;  %v473_v30 = vpop.f32.mrb[32].mxu0  ;;  %1371 = vmatprep.subr.bf16.mxu1 %v1984_v19 }
 0x13a   :  { %v475_v34 = vpop.f32.mrb[33].mxu0 }
 0x13b   :  { %v630_v36 = vmax.f32 %v614_v28, 0.0  ;;  %v477_v37 = vpop.f32.mrb[34].mxu0  ;;  %v791_v38 = vpack.c.bf16 %v629_v25, %v2459_v29  ;;  %v665_v41 = vrot.slane %v629_v25, 1  ;;  %v730_v42 = vrot.slane %v629_v25, 3 }
 0x13c   :  { %v479_v40 = vpop.f32.mrb[35].mxu0  ;;  %1372 = vmatpush1.bf16.msra.mxu1 %v1982_v24  ;;  %v697_v43 = vrot.slane %v629_v25, 2  ;;  %v763_v44 = vrot.slane %v629_v25, 4  ;;  %v1991_v24 = vld [vmem:[%s2682_s3 + $0x190] ss:$8 sps:$4 sm:$0xff]  }
 0x13d   :  { %v764_v45 = vrot.slane %v630_v36, 4  ;;  %v666_v47 = vrot.slane %v630_v36, 1  ;;  %1373 = vmatprep.subr.bf16.mxu1 %v1987_v33  ;;  %v731_v49 = vrot.slane %v630_v36, 3  ;;  %v698_v50 = vrot.slane %v630_v36, 2  ;;  %v1996_v33 = vld [vmem:[%s2682_s3 + $0x1a4] ss:$8 sps:$4 sm:$0xff]  }
 0x13f   :  { %v667_v29 = vsel %vm655_vm2, %v665_v41, %v666_v47  ;;  %v2514_v53 = vsel %vm720_vm4, %v730_v42, %v731_v49  ;;  %v2517_v58 = vsel %vm352_vm1, %v697_v43, %v698_v50  ;;  %v2520_v59 = vsel %vm753_vm3, %v763_v44, %v764_v45  ;;  %v1997_v44 = vld [vmem:[%s2682_s3 + $0x1b0] ss:$8 sps:$4 sm:$0xff]  }
 0x140   :  { %v792_v0 = vpack.c.bf16 %v667_v29, %v664_v51  ;;  %1374 = vmatpush1.bf16.msra.mxu1 %v1985_v39  ;;  %v794_v4 = vpack.c.bf16 %v2514_v53, %v2477_v52  ;;  %v1993_v51 = vld [vmem:[%s2682_s3 + $0x194] ss:$8 sps:$4 sm:$0xff]   ;;  %v2688_v14 = vpack.c.bf16 %v2517_v58, %v2480_v54 }
 0x141   :  { %v483_v9 = vpop.f32.mrb[36].mxu0  ;;  %1375 = vmatprep.subr.bf16.mxu1 %v1990_v48 }
 0x142   :  { %v568_v10 = vmax.f32 %v473_v30, %v483_v9  ;;  %v485_v11 = vpop.f32.mrb[37].mxu0  ;;  %1328 = vmatprep.mubr.bf16.mxu1 %v792_v0  ;;  %v2002_v0 = vld [vmem:[%s2682_s3 + $0x1c4] ss:$8 sps:$4 sm:$0xff]  }
 0x143   :  { %v569_v18 = vmax.f32 %v475_v34, %v485_v11  ;;  %v487_v19 = vpop.f32.mrb[38].mxu0  ;;  %1329 = vmatmul.mubr.bf16.gmra.mrb[4].mxu1 %v791_v38  ;;  %v1994_v34 = vld [vmem:[%s2682_s3 + $0x1a0] ss:$8 sps:$4 sm:$0xff]  }
 0x144   :  { %v570_v20 = vmax.f32 %v477_v37, %v487_v19  ;;  %v489_v21 = vpop.f32.mrb[39].mxu0  ;;  %1376 = vmatpush1.bf16.msra.mxu1 %v1988_v1 }
 0x145   :  { %v592_v25 = vmax.f32 %v568_v10, %v569_v18  ;;  %v571_v28 = vmax.f32 %v479_v40, %v489_v21  ;;  %1377 = vmatprep.subr.bf16.mxu1 %v1993_v51  ;;  %v1999_v40 = vld [vmem:[%s2682_s3 + $0x1b4] ss:$8 sps:$4 sm:$0xff]  }
 0x147   :  { %v615_v30 = vadd.f32 %v2410_v46, %v592_v25  ;;  %v593_v36 = vmax.f32 %v570_v20, %v571_v28  ;;  %v2000_v20 = vld [vmem:[%s2682_s3 + $0x1c0] ss:$8 sps:$4 sm:$0xff]  }
 0x148   :  { %1378 = vmatpush1.bf16.msra.mxu1 %v1991_v24  ;;  %v2005_v24 = vld [vmem:[%s2682_s3 + $0x1d4] ss:$8 sps:$4 sm:$0xff]  }
 0x149   :  { %v2544_v37 = vmax.f32 %v615_v30, 0.0  ;;  %v616_v38 = vadd.f32 %v2410_v46, %v593_v36  ;;  %v493_v39 = vpop.f32.mrb[40].mxu0  ;;  %1379 = vmatprep.subr.bf16.mxu1 %v1996_v33 }
 0x14a   :  { %v495_v41 = vpop.f32.mrb[41].mxu0 }
 0x14b   :  { %v632_v42 = vmax.f32 %v616_v38, 0.0  ;;  %v497_v43 = vpop.f32.mrb[42].mxu0  ;;  %v668_v47 = vrot.slane %v2544_v37, 1  ;;  %v733_v48 = vrot.slane %v2544_v37, 3  ;;  %v700_v49 = vrot.slane %v2544_v37, 2 }
 0x14c   :  { %v499_v45 = vpop.f32.mrb[43].mxu0  ;;  %1380 = vmatpush1.bf16.msra.mxu1 %v1994_v34  ;;  %v766_v50 = vrot.slane %v2544_v37, 4  ;;  %v2003_v38 = vld [vmem:[%s2682_s3 + $0x1d0] ss:$8 sps:$4 sm:$0xff]  }
 0x14d   :  { %v669_v29 = vrot.slane %v632_v42, 1  ;;  %1381 = vmatprep.subr.bf16.mxu1 %v1999_v40  ;;  %v734_v1 = vrot.slane %v632_v42, 3  ;;  %v701_v9 = vrot.slane %v632_v42, 2  ;;  %v767_v51 = vrot.slane %v632_v42, 4 }
 0x14f   :  { %v670_v10 = vsel %vm655_vm2, %v668_v47, %v669_v29  ;;  %v2562_v11 = vsel %vm720_vm4, %v733_v48, %v734_v1  ;;  %v2565_v18 = vsel %vm352_vm1, %v700_v49, %v701_v9  ;;  %v2568_v19 = vsel %vm753_vm3, %v766_v50, %v767_v51  ;;  %v2009_v9 = vld [vmem:[%s2682_s3 + $0x1f0] ss:$8 sps:$4 sm:$0xff]  }
 0x150   :  { %1382 = vmatpush1.bf16.msra.mxu1 %v1997_v44  ;;  %v2008_v44 = vld [vmem:[%s2682_s3 + $0x1e4] ss:$8 sps:$4 sm:$0xff]  }
 0x151   :  { %v503_v21 = vpop.f32.mrb[44].mxu0  ;;  %1383 = vmatprep.subr.bf16.mxu1 %v2002_v0 }
 0x152   :  { %v572_v25 = vmax.f32 %v493_v39, %v503_v21  ;;  %v505_v28 = vpop.f32.mrb[45].mxu0 }
 0x153   :  { %v573_v33 = vmax.f32 %v495_v41, %v505_v28  ;;  %v507_v30 = vpop.f32.mrb[46].mxu0  ;;  %v2006_v41 = vld [vmem:[%s2682_s3 + $0x1e0] ss:$8 sps:$4 sm:$0xff]  }
 0x154   :  { %v574_v36 = vmax.f32 %v497_v43, %v507_v30  ;;  %v509_v34 = vpop.f32.mrb[47].mxu0  ;;  %1384 = vmatpush1.bf16.msra.mxu1 %v2000_v20 }
 0x155   :  { %v594_v40 = vmax.f32 %v572_v25, %v573_v33  ;;  %v575_v42 = vmax.f32 %v499_v45, %v509_v34  ;;  %1385 = vmatprep.subr.bf16.mxu1 %v2005_v24  ;;  %v2011_v45 = vld [vmem:[%s2682_s3 + $0x1f4] ss:$8 sps:$4 sm:$0xff]  }
 0x157   :  { %v617_v47 = vadd.f32 %v2410_v46, %v594_v40  ;;  %v595_v39 = vmax.f32 %v574_v36, %v575_v42 }
 0x158   :  { %1386 = vmatpush1.bf16.msra.mxu1 %v2003_v38 }
 0x159   :  { %v633_v43 = vmax.f32 %v617_v47, 0.0  ;;  %v618_v48 = vadd.f32 %v2410_v46, %v595_v39  ;;  %v513_v49 = vpop.f32.mrb[48].mxu0  ;;  %1387 = vmatprep.subr.bf16.mxu1 %v2008_v44 }
 0x15a   :  { %v515_v50 = vpop.f32.mrb[49].mxu0 }
 0x15b   :  { %v634_v29 = vmax.f32 %v618_v48, 0.0  ;;  %v517_v0 = vpop.f32.mrb[50].mxu0  ;;  %v796_v1 = vpack.c.bf16 %v633_v43, %v2544_v37  ;;  %v671_v20 = vrot.slane %v633_v43, 1  ;;  %v736_v21 = vrot.slane %v633_v43, 3 }
 0x15c   :  { %v519_v51 = vpop.f32.mrb[51].mxu0  ;;  %1388 = vmatpush1.bf16.msra.mxu1 %v2006_v41  ;;  %v703_v24 = vrot.slane %v633_v43, 2  ;;  %v769_v25 = vrot.slane %v633_v43, 4 }
 0x15d   :  { %v672_v28 = vrot.slane %v634_v29, 1  ;;  %1389 = vmatprep.subr.bf16.mxu1 %v2011_v45  ;;  %v737_v33 = vrot.slane %v634_v29, 3  ;;  %v704_v30 = vrot.slane %v634_v29, 2  ;;  %v770_v36 = vrot.slane %v634_v29, 4 }
 0x15f   :  { %v673_v34 = vsel %vm655_vm2, %v671_v20, %v672_v28  ;;  %v2596_v38 = vsel %vm720_vm4, %v736_v21, %v737_v33  ;;  %v2599_v37 = vsel %vm352_vm1, %v703_v24, %v704_v30  ;;  %v2602_v40 = vsel %vm753_vm3, %v769_v25, %v770_v36 }
 0x160   :  { %v797_v42 = vpack.c.bf16 %v673_v34, %v670_v10  ;;  %1390 = vmatpush1.bf16.msra.mxu1 %v2009_v9  ;;  %v2689_v15 = vpack.c.bf16 %v2596_v38, %v2562_v11 }
 0x161   :  { %v523_v41 = vpop.f32.mrb[52].mxu0  ;;  %1768 = vmatprep.subr.bf16.mxu1 %v2238_v60 }
 0x162   :  { %v576_v43 = vmax.f32 %v513_v49, %v523_v41  ;;  %v525_v48 = vpop.f32.mrb[53].mxu0  ;;  %1338 = vmatprep.mubr.bf16.mxu1 %v797_v42 }
 0x163   :  { %v577_v45 = vmax.f32 %v515_v50, %v525_v48  ;;  %v527_v29 = vpop.f32.mrb[54].mxu0  ;;  %1339 = vmatmul.mubr.bf16.gmra.mrb[8].mxu1 %v796_v1 }
 0x164   :  { %v578_v10 = vmax.f32 %v517_v0, %v527_v29  ;;  %v529_v9 = vpop.f32.mrb[55].mxu0 }
 0x165   :  { %v596_v20 = vmax.f32 %v576_v43, %v577_v45  ;;  %v579_v21 = vmax.f32 %v519_v51, %v529_v9 }
 0x167   :  { %v619_v24 = vadd.f32 %v2410_v46, %v596_v20  ;;  %v597_v25 = vmax.f32 %v578_v10, %v579_v21 }
 0x169   :  { %v635_v28 = vmax.f32 %v619_v24, 0.0  ;;  %v620_v33 = vadd.f32 %v2410_v46, %v597_v25  ;;  %v533_v30 = vpop.f32.mrb[56].mxu0 }
 0x16a   :  { %v535_v36 = vpop.f32.mrb[57].mxu0 }
 0x16b   :  { %v636_v34 = vmax.f32 %v620_v33, 0.0  ;;  %v537_v60 = vpop.f32.mrb[58].mxu0  ;;  %v674_v41 = vrot.slane %v635_v28, 1  ;;  %v739_v42 = vrot.slane %v635_v28, 3  ;;  %v706_v50 = vrot.slane %v635_v28, 2 }
 0x16c   :  { %v539_v49 = vpop.f32.mrb[59].mxu0  ;;  %v772_v48 = vrot.slane %v635_v28, 4 }
 0x16d   :  { %v675_v1 = vrot.slane %v636_v34, 1  ;;  %v740_v0 = vrot.slane %v636_v34, 3  ;;  %v707_v29 = vrot.slane %v636_v34, 2  ;;  %v773_v43 = vrot.slane %v636_v34, 4 }
 0x16f   :  { %v676_v51 = vsel %vm655_vm2, %v674_v41, %v675_v1  ;;  %v741_v45 = vsel %vm720_vm4, %v739_v42, %v740_v0  ;;  %v708_v10 = vsel %vm352_vm1, %v706_v50, %v707_v29  ;;  %v774_v9 = vsel %vm753_vm3, %v772_v48, %v773_v43 }
 0x171   :  { %v543_v20 = vpop.f32.mrb[60].mxu0 }
 0x172   :  { %v580_v21 = vmax.f32 %v533_v30, %v543_v20  ;;  %v545_v24 = vpop.f32.mrb[61].mxu0 }
 0x173   :  { %v581_v25 = vmax.f32 %v535_v36, %v545_v24  ;;  %v547_v33 = vpop.f32.mrb[62].mxu0 }
 0x174   :  { %v582_v39 = vmax.f32 %v537_v60, %v547_v33  ;;  %v549_v8 = vpop.f32.mrb[63].mxu0 }
 0x175   :  { %v598_v35 = vmax.f32 %v580_v21, %v581_v25  ;;  %v583_v47 = vmax.f32 %v539_v49, %v549_v8 }
 0x177   :  { %v621_v44 = vadd.f32 %v2410_v46, %v598_v35  ;;  %v599_v34 = vmax.f32 %v582_v39, %v583_v47 }
 0x179   :  { %v637_v5 = vmax.f32 %v621_v44, 0.0  ;;  %v622_v41 = vadd.f32 %v2410_v46, %v599_v34 }
 0x17b   :  { %v638_v42 = vmax.f32 %v622_v41, 0.0  ;;  %v801_v1 = vpack.c.bf16 %v637_v5, %v635_v28  ;;  %v677_v50 = vrot.slane %v637_v5, 1  ;;  %v742_v0 = vrot.slane %v637_v5, 3 }
 0x17c   :  { %v709_v48 = vrot.slane %v637_v5, 2  ;;  %v775_v29 = vrot.slane %v637_v5, 4 }
 0x17d   :  { %v678_v30 = vrot.slane %v638_v42, 1  ;;  %v743_v43 = vrot.slane %v638_v42, 3  ;;  %v710_v36 = vrot.slane %v638_v42, 2  ;;  %v776_v20 = vrot.slane %v638_v42, 4 }
 0x17f   :  { %v679_v60 = vsel %vm655_vm2, %v677_v50, %v678_v30  ;;  %v744_v8 = vsel %vm720_vm4, %v742_v0, %v743_v43  ;;  %v711_v35 = vsel %vm352_vm1, %v709_v48, %v710_v36  ;;  %v777_v44 = vsel %vm753_vm3, %v775_v29, %v776_v20 }
 0x180   :  { %v802_v47 = vpack.c.bf16 %v679_v60, %v676_v51  ;;  %v804_v46 = vpack.c.bf16 %v744_v8, %v741_v45  ;;  %v803_v39 = vpack.c.bf16 %v711_v35, %v708_v10  ;;  %v805_v28 = vpack.c.bf16 %v777_v44, %v774_v9 }
 0x182   :  { %1348 = vmatprep.mubr.bf16.mxu1 %v802_v47 }
 0x183   :  { %1349 = vmatmul.mubr.bf16.gmra.mrb[12].mxu1 %v801_v1 }
 0x184   :  { %1391 = vmatprep.mubr.bf16.mxu1 %v789_v62 }
 0x18b   :  { %1392 = vmatmul.mubr.bf16.vlgmr.msra.gmra.mrb[0].mxu1 %v788_v63 }
 0x18c   :  { %1776 = vmatpush1.bf16.msra.mxu1 %v2243_v61  ;;  %1401 = vmatprep.mubr.bf16.mxu1 %v794_v4  ;;  %v2690_v61 = vpack.c.bf16 %v2599_v37, %v2565_v18 }
 0x18d   :  { %1769 = vmatprep.subr.bf16.mxu1 %v2262_v2  ;;  %v2691_v2 = vmov 0  }
 0x190   :  { %1777 = vmatpush1.bf16.msra.mxu1 %v2267_v3  ;;  %v2692_v3 = vpack.c.bf16 %v2520_v59, %v2483_v55 }
 0x191   :  { %1770 = vmatprep.subr.bf16.mxu1 %v2281_v6  ;;  %v2693_v6 = vpack.c.bf16 %v2602_v40, %v2568_v19 }
 0x193   :  { %1402 = vmatmul.mubr.bf16.gmra.mrb[4].mxu1 %v2688_v14 }
 0x194   :  { %1778 = vmatpush1.bf16.msra.mxu1 %v2286_v7  ;;  %1411 = vmatprep.mubr.bf16.mxu1 %v2689_v15 }
 0x195   :  { %1771 = vmatprep.subr.bf16.mxu1 %v2305_v12 }
 0x198   :  { %1779 = vmatpush1.bf16.msra.mxu1 %v2310_v13 }
 0x199   :  { %1772 = vmatprep.subr.bf16.mxu1 %v2324_v16 }
 0x19b   :  { %1412 = vmatmul.mubr.bf16.gmra.mrb[8].mxu1 %v2690_v61 }
 0x19c   :  { %1780 = vmatpush1.bf16.msra.mxu1 %v2329_v17  ;;  %1421 = vmatprep.mubr.bf16.mxu1 %v804_v46 }
 0x19d   :  { %1773 = vmatprep.subr.bf16.mxu1 %v2348_v22 }
 0x1a0   :  { %1781 = vmatpush1.bf16.msra.mxu1 %v2353_v23 }
 0x1a1   :  { %1774 = vmatprep.subr.bf16.mxu1 %v2367_v26 }
 0x1a3   :  { %1422 = vmatmul.mubr.bf16.gmra.mrb[12].mxu1 %v803_v39 }
 0x1a4   :  { %1782 = vmatpush1.bf16.msra.mxu1 %v2372_v27  ;;  %1474 = vmatprep.mubr.bf16.mxu1 %v2691_v2 }
 0x1a5   :  { %1775 = vmatprep.subr.bf16.mxu1 %v2388_v31  ;;  %v1728_v31 = vld [vmem:[%s2684_s4] ss:$0 sm:$0xff] }
 0x1a8   :  { %1783 = vmatpush1.bf16.msra.mxu1 %v2393_v32 }
 0x1ab   :  { %1475 = vmatmul.mubr.bf16.vlgmr.msra.gmra.mrb[4].mxu1 %v2692_v3 }
 0x1ac   :  { %1484 = vmatprep.mubr.bf16.mxu1 %v2691_v2 }
 0x1b3   :  { %1485 = vmatmul.mubr.bf16.gmra.mrb[8].mxu1 %v2693_v6 }
 0x1b4   :  { %1494 = vmatprep.mubr.bf16.mxu1 %v2691_v2 }
 0x1bb   :  { %1495 = vmatmul.mubr.bf16.gmra.mrb[12].mxu1 %v805_v28 }
 0x1f5   :  { %v1466_v7 = vpop.f32.mrb[64].mxu0 }
 0x1f6   :  { %v1468_v12 = vpop.f32.mrb[65].mxu0 }
 0x1f7   :  { %v1470_v13 = vpop.f32.mrb[66].mxu0 }
 0x1f8   :  { %v1472_v16 = vpop.f32.mrb[67].mxu0 }
 0x25e   :  { %v1393_v17 = vpop.f32.mrb[0].mxu1 }
 0x25f   :  { %v1784_v22 = vadd.f32 %v1466_v7, %v1393_v17  ;;  %v1395_v23 = vpop.f32.mrb[1].mxu1 }
 0x260   :  { %v1785_v26 = vadd.f32 %v1468_v12, %v1395_v23  ;;  %v1397_v27 = vpop.f32.mrb[2].mxu1 }
 0x261   :  { %v1786_v32 = vadd.f32 %v1470_v13, %v1397_v27  ;;  %v1399_v56 = vpop.f32.mrb[3].mxu1 }
 0x262   :  { %v1505_v57 = vmax.f32 %v1784_v22, %v1785_v26  ;;  %v1787_v62 = vadd.f32 %v1472_v16, %v1399_v56 }
 0x264   :  { %v1520_v63 = vadd.f32 %v1728_v31, %v1505_v57  ;;  %v1506_v52 = vmax.f32 %v1786_v32, %v1787_v62 }
 0x266   :  { %v1521_v54 = vadd.f32 %v1728_v31, %v1506_v52  ;;  %v1528_v55 = vmax.f32 %v1520_v63, 0.0 }
 0x268   :  { %v1529_v53 = vmax.f32 %v1521_v54, 0.0 }
 0x26a   :  { %v1748_v58 = vpack.c.bf16 %v1529_v53, %v1528_v55 }
 0x26c   :  { %1749 = vst [vmem:[%s2685_s5] sm:$0xff] %v1748_v58  }
 0x27e   :  { %v1476_v59 = vpop.f32.mrb[4].mxu1 }
 0x27f   :  { %v1478_v4 = vpop.f32.mrb[5].mxu1 }
 0x280   :  { %v1507_v5 = vmax.f32 %v1476_v59, %v1478_v4  ;;  %v1480_v11 = vpop.f32.mrb[6].mxu1 }
 0x281   :  { %v1482_v18 = vpop.f32.mrb[7].mxu1 }
 0x282   :  { %v1522_v19 = vadd.f32 %v1728_v31, %v1507_v5  ;;  %v1508_v38 = vmax.f32 %v1480_v11, %v1482_v18 }
 0x284   :  { %v1523_v37 = vadd.f32 %v1728_v31, %v1508_v38  ;;  %v1530_v40 = vmax.f32 %v1522_v19, 0.0 }
 0x286   :  { %v1531_v49 = vmax.f32 %v1523_v37, 0.0  ;;  %v1486_v51 = vpop.f32.mrb[8].mxu1 }
 0x287   :  { %v1488_v45 = vpop.f32.mrb[9].mxu1 }
 0x288   :  { %v1753_v10 = vpack.c.bf16 %v1531_v49, %v1530_v40  ;;  %v1509_v9 = vmax.f32 %v1486_v51, %v1488_v45  ;;  %v1490_v21 = vpop.f32.mrb[10].mxu1 }
 0x289   :  { %v1492_v24 = vpop.f32.mrb[11].mxu1 }
 0x28a   :  { %1765 = vst [vmem:[%s2685_s5 + $0x8] sm:$0xff] %v1753_v10   ;;  %v1524_v25 = vadd.f32 %v1728_v31, %v1509_v9  ;;  %v1510_v33 = vmax.f32 %v1490_v21, %v1492_v24 }
 0x28c   :  { %v1525_v34 = vadd.f32 %v1728_v31, %v1510_v33  ;;  %v1532_v41 = vmax.f32 %v1524_v25, 0.0 }
 0x28e   :  { %v1533_v42 = vmax.f32 %v1525_v34, 0.0  ;;  %v1496_v1 = vpop.f32.mrb[12].mxu1 }
 0x28f   :  { %v1498_v50 = vpop.f32.mrb[13].mxu1 }
 0x290   :  { %v1758_v0 = vpack.c.bf16 %v1533_v42, %v1532_v41  ;;  %v1511_v48 = vmax.f32 %v1496_v1, %v1498_v50  ;;  %v1500_v29 = vpop.f32.mrb[14].mxu1 }
 0x291   :  { %v1502_v30 = vpop.f32.mrb[15].mxu1 }
 0x292   :  { %1766 = vst [vmem:[%s2685_s5 + $0x10] sm:$0xff] %v1758_v0   ;;  %v1526_v43 = vadd.f32 %v1728_v31, %v1511_v48  ;;  %v1512_v36 = vmax.f32 %v1500_v29, %v1502_v30 }
 0x294   :  { %v1527_v20 = vadd.f32 %v1728_v31, %v1512_v36  ;;  %v1534_v60 = vmax.f32 %v1526_v43, 0.0 }
 0x296   :  { %v1535_v8 = vmax.f32 %v1527_v20, 0.0 }
 0x298   :  { %v1763_v35 = vpack.c.bf16 %v1535_v8, %v1534_v60 }
 0x29a   :  { %1767 = vst [vmem:[%s2685_s5 + $0x18] sm:$0xff] %v1763_v35  }

</bundles_post_ra>
